<compile_context>
chip_gen: v5e
topology: v5e:2x2
jax: 0.10.0
libtpu: 0.0.40
codegen_flags: <defaults>
</compile_context>

<pallas_src>
import functools
import numpy as np

import jax
import jax.numpy as jnp
from jax import lax
from jax.experimental import pallas as pl
from jax.experimental.pallas import tpu as pltpu


# ---------------------------------------------------------------------------
# constants (cached banded Gaussian matrices, passed to the kernel as bf16)
# ---------------------------------------------------------------------------
_WIN = 11
_SIGMA = 1.5


@functools.lru_cache(maxsize=None)
def _gaussian_band_np(n):
    """(n, n) symmetric banded matrix: 1-D Gaussian conv, zero 'same' padding."""
    xs = np.arange(_WIN, dtype=np.float64) - _WIN // 2
    g = np.exp(-(xs ** 2) / (2.0 * _SIGMA ** 2))
    g = (g / g.sum()).astype(np.float32)
    idx = np.arange(n)
    diff = idx[None, :] - idx[:, None]
    mat = np.zeros((n, n), np.float32)
    mask = np.abs(diff) <= _WIN // 2
    mat[mask] = g[(diff + _WIN // 2)[mask]]
    return mat


def _pick_tile_b(batch, per_sample_bytes, budget=8 << 20):
    """Largest divisor of batch that fits the VMEM budget, keeping >=2 tiles."""
    best = 1
    for d in range(1, batch + 1):
        if batch % d != 0:
            continue
        if batch >= 2 and batch // d < 2:      # keep >= 2 grid steps (v7x 2 TCs)
            continue
        if d * per_sample_bytes > budget:
            continue
        best = d
    return best


# ---------------------------------------------------------------------------
# Fused kernel.
#   grid = (batch_tiles, feature_chunks);  refs:
#   (src1, src2, gen, Gh, Gw, featF, featS1, featS2, wvec, out)
# ---------------------------------------------------------------------------
def _fusion_loss_kernel(src1_ref, src2_ref, gen_ref, gh_ref, gw_ref,
                        f_ref, s1_ref, s2_ref, w_ref, out_ref,
                        *, tile_b, H, W, C1, C2):
    chunk = pl.program_id(1)

    # ---------------- SSIM + grad terms: only once per batch tile -----------
    @pl.when(chunk == 0)
    def _ssim_and_grad():
        x1 = src1_ref[...].astype(jnp.float32)          # (TB, H, W)
        x2 = src2_ref[...].astype(jnp.float32)
        xg = gen_ref[...].astype(jnp.float32)
        gh_b = gh_ref[...]                               # (H, H) bf16
        gw_b = gw_ref[...]                               # (W, W) bf16
        inv_hw = 1.0 / float(H * W)
        n_maps = 5 * tile_b

        def flat(a):                                     # (TB,H,W) -> (TB*H, W)
            return a.reshape(tile_b * H, W)

        # -- SSIM(SOURCE1, SOURCE2): moments in f32 (VPU), blur = 2 bf16 matmuls.
        stack = jnp.concatenate(
            [flat(x1), flat(x2), flat(x1 * x1), flat(x2 * x2), flat(x1 * x2)],
            axis=0)                                      # (5*TB*H, W) f32
        # pass 1 (along W): one wide-M matmul
        t = jnp.dot(stack.astype(jnp.bfloat16), gw_b,
                    preferred_element_type=jnp.float32)  # (5*TB*H, W) f32
        # relayout row-stacked -> lane-stacked so pass 2 is also ONE matmul
        t_b16 = t.astype(jnp.bfloat16)
        t_lane = jnp.concatenate(
            [t_b16[i * H:(i + 1) * H, :] for i in range(n_maps)],
            axis=1)                                      # (H, n_maps*W) bf16
        u = jnp.dot(gh_b, t_lane,
                    preferred_element_type=jnp.float32)  # (H, n_maps*W) f32

        g = tile_b * W                                   # lane width per map group
        maps = [u[:, k * g:(k + 1) * g] for k in range(5)]
        mu1, mu2, e11, e22, e12 = maps
        mu1_sq = mu1 * mu1
        mu2_sq = mu2 * mu2
        mu12 = mu1 * mu2
        sig1 = e11 - mu1_sq
        sig2 = e22 - mu2_sq
        sig12 = e12 - mu12
        num = (2.0 * mu12 + C1) * (2.0 * sig12 + C2)
        den = (mu1_sq + mu2_sq + C1) * (sig1 + sig2 + C2)
        ssim_map = num * pl.reciprocal(den, approx=True)  # (H, TB*W)
        ssim_col = jnp.concatenate(
            [jnp.sum(ssim_map[:, b * W:(b + 1) * W]).reshape(1, 1)
             for b in range(tile_b)], axis=0) * inv_hw    # (TB, 1)

        # -- grad term: 3x3 stencil = box3/8 - (9/8)*center, shifts on VPU/XLU.
        def box3(a):                                      # zero 'same' padding
            zc = jnp.zeros((tile_b, H, 1), jnp.float32)
            s = (a
                 + jnp.concatenate([zc, a[:, :, :-1]], axis=2)
                 + jnp.concatenate([a[:, :, 1:], zc], axis=2))
            zr = jnp.zeros((tile_b, 1, W), jnp.float32)
            return (s
                    + jnp.concatenate([zr, s[:, :-1, :]], axis=1)
                    + jnp.concatenate([s[:, 1:, :], zr], axis=1))

        def grad_of(a):
            return 0.125 * box3(a) - 1.125 * a

        d1 = grad_of(xg - x1)                             # grad() is linear
        d2 = grad_of(xg - x2)
        grad1_col = jnp.sum(jnp.sum(d1 * d1, axis=2), axis=1,
                            keepdims=True) * inv_hw       # (TB, 1)
        grad2_col = jnp.sum(jnp.sum(d2 * d2, axis=2), axis=1,
                            keepdims=True) * inv_hw

        lane = lax.broadcasted_iota(jnp.int32, (tile_b, 128), 1)
        base = (jnp.where(lane == 0, ssim_col, 0.0)
                + jnp.where(lane == 1, grad1_col, 0.0)
                + jnp.where(lane == 2, grad2_col, 0.0))
        out_ref[...] = base[None]                         # (1, TB, 128)

    # ---------------- perceptual term: streamed feature chunk ---------------
    f = f_ref[...].astype(jnp.float32)                    # (TB, CR, 128)
    s1 = s1_ref[...].astype(jnp.float32)
    s2 = s2_ref[...].astype(jnp.float32)
    w = w_ref[...]                                        # (CR, 128) f32 weights
    r1 = f - s1
    r2 = f - s2
    p1 = jnp.sum(jnp.sum(w[None] * r1 * r1, axis=2), axis=1, keepdims=True)
    p2 = jnp.sum(jnp.sum(w[None] * r2 * r2, axis=2), axis=1, keepdims=True)
    lane = lax.broadcasted_iota(jnp.int32, (tile_b, 128), 1)
    contrib = jnp.where(lane == 3, p1, 0.0) + jnp.where(lane == 4, p2, 0.0)
    out_ref[...] = out_ref[...] + contrib[None]


# ---------------------------------------------------------------------------
# Fusion_loss forward (one pallas_call; tiny weighted means in plain JAX)
# ---------------------------------------------------------------------------
def fusion_loss_forward(SOURCE1, SOURCE2, S1_FEAS, S2_FEAS, F_FEAS,
                        generated_img, W1, W2, data_range=1.0):
    B = SOURCE1.shape[0]
    H, W = SOURCE1.shape[-2], SOURCE1.shape[-1]
    n_levels = len(F_FEAS)
    assert len(S1_FEAS) == n_levels and len(S2_FEAS) == n_levels and n_levels > 0

    src1 = SOURCE1[:, 0]                                  # (B, H, W) single channel
    src2 = SOURCE2[:, 0]
    gen = generated_img[:, 0]

    Gh = jnp.asarray(_gaussian_band_np(H), jnp.bfloat16)
    Gw = jnp.asarray(_gaussian_band_np(W), jnp.bfloat16)

    # ---- flatten + concatenate feature levels once; per-element weight vector
    #      w[i] = 1 / (numel(level) * n_levels) folds Per_LOSS + level mean.
    sizes = [int(np.prod(f.shape[1:])) for f in F_FEAS]
    ntot = int(sum(sizes))
    featF = jnp.concatenate([f.reshape(B, -1) for f in F_FEAS], axis=1)
    featS1 = jnp.concatenate([f.reshape(B, -1) for f in S1_FEAS], axis=1)
    featS2 = jnp.concatenate([f.reshape(B, -1) for f in S2_FEAS], axis=1)
    w_np = np.concatenate(
        [np.full((n,), 1.0 / (float(n) * n_levels), np.float32) for n in sizes])

    rows = -(-ntot // 128)
    r8 = -(-rows // 8) * 8
    chunk_rows = min(r8, 1024)
    if r8 >= 16:                                          # keep >= 2 chunks
        chunk_rows = min(chunk_rows, max(8, (r8 // 2) // 8 * 8))
    num_chunks = -(-r8 // chunk_rows)
    r_pad = num_chunks * chunk_rows
    pad = r_pad * 128 - ntot
    if pad:
        featF = jnp.pad(featF, ((0, 0), (0, pad)))
        featS1 = jnp.pad(featS1, ((0, 0), (0, pad)))
        featS2 = jnp.pad(featS2, ((0, 0), (0, pad)))
        w_np = np.pad(w_np, (0, pad))
    featF = featF.reshape(B, r_pad, 128)
    featS1 = featS1.reshape(B, r_pad, 128)
    featS2 = featS2.reshape(B, r_pad, 128)
    wvec = jnp.asarray(w_np.reshape(r_pad, 128))

    # ---- pick TILE_B from a VMEM budget, keep >= 2 batch tiles for megacore
    feat_isz = jnp.dtype(featF.dtype).itemsize
    per_sample_bytes = (3 * H * W * 4 + 20 * H * W * 4
                        + 3 * chunk_rows * 128 * feat_isz)
    tile_b = _pick_tile_b(B, per_sample_bytes)
    num_tiles = B // tile_b

    C1 = float((0.01 * data_range) ** 2)
    C2 = float((0.03 * data_range) ** 2)

    in_specs = [
        pl.BlockSpec((tile_b, H, W), lambda t, c: (t, 0, 0)),      # SOURCE1
        pl.BlockSpec((tile_b, H, W), lambda t, c: (t, 0, 0)),      # SOURCE2
        pl.BlockSpec((tile_b, H, W), lambda t, c: (t, 0, 0)),      # generated
        pl.BlockSpec((H, H), lambda t, c: (0, 0)),                 # Gh (bf16)
        pl.BlockSpec((W, W), lambda t, c: (0, 0)),                 # Gw (bf16)
        pl.BlockSpec((tile_b, chunk_rows, 128), lambda t, c: (t, c, 0)),  # F
        pl.BlockSpec((tile_b, chunk_rows, 128), lambda t, c: (t, c, 0)),  # S1
        pl.BlockSpec((tile_b, chunk_rows, 128), lambda t, c: (t, c, 0)),  # S2
        pl.BlockSpec((chunk_rows, 128), lambda t, c: (c, 0)),      # weights
    ]
    out_specs = pl.BlockSpec((1, tile_b, 128), lambda t, c: (t, 0, 0))

    # explicit scoped-VMEM budget (2x double-buffered blocks + intermediates)
    block_bytes = (3 * tile_b * H * W * jnp.dtype(src1.dtype).itemsize
                   + 2 * (H * H + W * W)
                   + 3 * tile_b * chunk_rows * 128 * feat_isz
                   + chunk_rows * 128 * 4 + tile_b * 128 * 4)
    interm_bytes = 20 * tile_b * H * W * 4
    vmem_limit = int(min(64 << 20, max(32 << 20, 4 * (2 * block_bytes + interm_bytes))))

    out = pl.pallas_call(
        functools.partial(_fusion_loss_kernel, tile_b=tile_b, H=H, W=W,
                          C1=C1, C2=C2),
        out_shape=jax.ShapeDtypeStruct((num_tiles, tile_b, 128), jnp.float32),
        grid=(num_tiles, num_chunks),
        in_specs=in_specs,
        out_specs=out_specs,
        compiler_params=pltpu.CompilerParams(
            dimension_semantics=("parallel", "arbitrary"),
            vmem_limit_bytes=vmem_limit),
    )(src1, src2, gen, Gh, Gw, featF, featS1, featS2, wvec)

    res = out.reshape(B, 128)                    # packed per-sample scalars
    ssim1 = res[:, 0]
    ssim2 = ssim1          # original module: ssim1 and ssim2 on identical args
    grad1 = res[:, 1]
    grad2 = res[:, 2]
    per1 = res[:, 3]                             # already averaged over levels
    per2 = res[:, 4]

    ssim_loss = jnp.mean(W1 * ssim1 + W2 * ssim2)
    per_loss = jnp.mean(W1 * per1 + W2 * per2)
    grad_loss = jnp.mean(W1 * grad1 + W2 * grad2)
    content_loss = ssim_loss + 4e-05 * per_loss + 1800.0 * grad_loss
    return ssim_loss, per_loss, grad_loss, content_loss


if __name__ == "__main__":
    B, H, W = 4, 16, 16
    key = jax.random.PRNGKey(0)
    keys = jax.random.split(key, 9)

    SOURCE1 = jax.random.uniform(keys[0], (B, 1, H, W), jnp.float32)
    SOURCE2 = jax.random.uniform(keys[1], (B, 1, H, W), jnp.float32)
    generated_img = jax.random.uniform(keys[2], (B, 1, H, W), jnp.float32)

    # two feature levels per source / fused image
    S1_FEAS = [jax.random.normal(keys[3], (B, 4, 16, 16), jnp.float32),
               jax.random.normal(keys[4], (B, 8, 8, 8), jnp.float32)]
    S2_FEAS = [jax.random.normal(keys[5], (B, 4, 16, 16), jnp.float32),
               jax.random.normal(keys[6], (B, 8, 8, 8), jnp.float32)]
    F_FEAS = [jax.random.normal(keys[7], (B, 4, 16, 16), jnp.float32),
              jax.random.normal(keys[8], (B, 8, 8, 8), jnp.float32)]

    # deterministic per-sample fusion weights (module leaves W1/W2 to be set)
    W1 = 0.5 * jnp.ones((B,), jnp.float32)
    W2 = 0.5 * jnp.ones((B,), jnp.float32)

    outs = fusion_loss_forward(SOURCE1, SOURCE2, S1_FEAS, S2_FEAS, F_FEAS,
                               generated_img, W1, W2)
    jax.block_until_ready(outs)
    vals = np.array([float(v) for v in outs])
    assert np.all(np.isfinite(vals)), vals
    print("KERNEL_OK")
</pallas_src>

<mosaic_0001>
module attributes {stable_mosaic.version = 11 : i64} {
  func.func @_fusion_loss_kernel(%arg0: i32, %arg1: i32, %arg2: memref<2x16x16xf32, #tpu.memory_space<vmem>>, %arg3: memref<2x16x16xf32, #tpu.memory_space<vmem>>, %arg4: memref<2x16x16xf32, #tpu.memory_space<vmem>>, %arg5: memref<16x16xbf16, #tpu.memory_space<vmem>>, %arg6: memref<16x16xbf16, #tpu.memory_space<vmem>>, %arg7: memref<2x8x128xf32, #tpu.memory_space<vmem>>, %arg8: memref<2x8x128xf32, #tpu.memory_space<vmem>>, %arg9: memref<2x8x128xf32, #tpu.memory_space<vmem>>, %arg10: memref<8x128xf32, #tpu.memory_space<vmem>>, %arg11: memref<1x2x128xf32, #tpu.memory_space<vmem>>) attributes {dimension_semantics = [#tpu.dimension_semantics<parallel>, #tpu.dimension_semantics<arbitrary>], iteration_bounds = array<i64: 2, 2>, scalar_prefetch = 0 : i64, scratch_operands = 0 : i64, tpu.core_type = #tpu.core_type<tc>, window_params = [{transform_indices = @transform_0, window_bounds = array<i64: 2, 16, 16>}, {transform_indices = @transform_1, window_bounds = array<i64: 2, 16, 16>}, {transform_indices = @transform_2, window_bounds = array<i64: 2, 16, 16>}, {pipeline_mode = #tpu.pipeline_mode<synchronous>, transform_indices = @transform_3, window_bounds = array<i64: 16, 16>}, {pipeline_mode = #tpu.pipeline_mode<synchronous>, transform_indices = @transform_4, window_bounds = array<i64: 16, 16>}, {transform_indices = @transform_5, window_bounds = array<i64: 2, 8, 128>}, {transform_indices = @transform_6, window_bounds = array<i64: 2, 8, 128>}, {transform_indices = @transform_7, window_bounds = array<i64: 2, 8, 128>}, {transform_indices = @transform_8, window_bounds = array<i64: 8, 128>}, {transform_indices = @transform_9, window_bounds = array<i64: 1, 2, 128>}]} {
    %c0_i32 = arith.constant 0 : i32
    %0 = arith.cmpi eq, %arg1, %c0_i32 : i32
    %1 = arith.extui %0 : i1 to i32
    %c0_i32_0 = arith.constant 0 : i32
    %2 = arith.cmpi ne, %1, %c0_i32_0 : i32
    scf.if %2 {
      %c0_22 = arith.constant 0 : index
      %c0_23 = arith.constant 0 : index
      %c0_24 = arith.constant 0 : index
      %41 = vector.load %arg2[%c0_22, %c0_23, %c0_24] : memref<2x16x16xf32, #tpu.memory_space<vmem>>, vector<2x16x16xf32>
      %c0_25 = arith.constant 0 : index
      %c0_26 = arith.constant 0 : index
      %c0_27 = arith.constant 0 : index
      %42 = vector.load %arg3[%c0_25, %c0_26, %c0_27] : memref<2x16x16xf32, #tpu.memory_space<vmem>>, vector<2x16x16xf32>
      %c0_28 = arith.constant 0 : index
      %c0_29 = arith.constant 0 : index
      %c0_30 = arith.constant 0 : index
      %43 = vector.load %arg4[%c0_28, %c0_29, %c0_30] : memref<2x16x16xf32, #tpu.memory_space<vmem>>, vector<2x16x16xf32>
      %c0_31 = arith.constant 0 : index
      %c0_32 = arith.constant 0 : index
      %44 = vector.load %arg5[%c0_31, %c0_32] : memref<16x16xbf16, #tpu.memory_space<vmem>>, vector<16x16xbf16>
      %c0_33 = arith.constant 0 : index
      %c0_34 = arith.constant 0 : index
      %45 = vector.load %arg6[%c0_33, %c0_34] : memref<16x16xbf16, #tpu.memory_space<vmem>>, vector<16x16xbf16>
      %46 = vector.shape_cast %41 : vector<2x16x16xf32> to vector<32x16xf32>
      %47 = vector.shape_cast %42 : vector<2x16x16xf32> to vector<32x16xf32>
      %48 = arith.mulf %41, %41 : vector<2x16x16xf32>
      %49 = vector.shape_cast %48 : vector<2x16x16xf32> to vector<32x16xf32>
      %50 = arith.mulf %42, %42 : vector<2x16x16xf32>
      %51 = vector.shape_cast %50 : vector<2x16x16xf32> to vector<32x16xf32>
      %52 = arith.mulf %41, %42 : vector<2x16x16xf32>
      %53 = vector.shape_cast %52 : vector<2x16x16xf32> to vector<32x16xf32>
      %54 = tpu.concatenate %46, %47, %49, %51, %53 in 0 : vector<32x16xf32>, vector<32x16xf32>, vector<32x16xf32>, vector<32x16xf32>, vector<32x16xf32> -> vector<160x16xf32>
      %55 = arith.truncf %54 : vector<160x16xf32> to vector<160x16xbf16>
      %cst_35 = arith.constant dense<0.000000e+00> : vector<160x16xf32>
      %56 = tpu.matmul %55, %45, %cst_35 {dimension_numbers = #tpu.dot_dimension_numbers<[1], [0], [0], [1], [0, 0, 1, 1], [], []>} : vector<160x16xbf16>, vector<16x16xbf16>, vector<160x16xf32> -> vector<160x16xf32>
      %57 = arith.truncf %56 : vector<160x16xf32> to vector<160x16xbf16>
      %58 = vector.extract_strided_slice %57 {offsets = [0, 0], sizes = [16, 16], strides = [1, 1]} : vector<160x16xbf16> to vector<16x16xbf16>
      %59 = vector.extract_strided_slice %57 {offsets = [16, 0], sizes = [16, 16], strides = [1, 1]} : vector<160x16xbf16> to vector<16x16xbf16>
      %60 = vector.extract_strided_slice %57 {offsets = [32, 0], sizes = [16, 16], strides = [1, 1]} : vector<160x16xbf16> to vector<16x16xbf16>
      %61 = vector.extract_strided_slice %57 {offsets = [48, 0], sizes = [16, 16], strides = [1, 1]} : vector<160x16xbf16> to vector<16x16xbf16>
      %62 = vector.extract_strided_slice %57 {offsets = [64, 0], sizes = [16, 16], strides = [1, 1]} : vector<160x16xbf16> to vector<16x16xbf16>
      %63 = vector.extract_strided_slice %57 {offsets = [80, 0], sizes = [16, 16], strides = [1, 1]} : vector<160x16xbf16> to vector<16x16xbf16>
      %64 = vector.extract_strided_slice %57 {offsets = [96, 0], sizes = [16, 16], strides = [1, 1]} : vector<160x16xbf16> to vector<16x16xbf16>
      %65 = vector.extract_strided_slice %57 {offsets = [112, 0], sizes = [16, 16], strides = [1, 1]} : vector<160x16xbf16> to vector<16x16xbf16>
      %66 = vector.extract_strided_slice %57 {offsets = [128, 0], sizes = [16, 16], strides = [1, 1]} : vector<160x16xbf16> to vector<16x16xbf16>
      %67 = vector.extract_strided_slice %57 {offsets = [144, 0], sizes = [16, 16], strides = [1, 1]} : vector<160x16xbf16> to vector<16x16xbf16>
      %68 = tpu.concatenate %58, %59, %60, %61, %62, %63, %64, %65, %66, %67 in 1 : vector<16x16xbf16>, vector<16x16xbf16>, vector<16x16xbf16>, vector<16x16xbf16>, vector<16x16xbf16>, vector<16x16xbf16>, vector<16x16xbf16>, vector<16x16xbf16>, vector<16x16xbf16>, vector<16x16xbf16> -> vector<16x160xbf16>
      %cst_36 = arith.constant dense<0.000000e+00> : vector<16x160xf32>
      %69 = tpu.matmul %44, %68, %cst_36 {dimension_numbers = #tpu.dot_dimension_numbers<[1], [0], [0], [1], [0, 0, 1, 1], [], []>} : vector<16x16xbf16>, vector<16x160xbf16>, vector<16x160xf32> -> vector<16x160xf32>
      %70 = vector.extract_strided_slice %69 {offsets = [0, 0], sizes = [16, 32], strides = [1, 1]} : vector<16x160xf32> to vector<16x32xf32>
      %71 = vector.extract_strided_slice %69 {offsets = [0, 32], sizes = [16, 32], strides = [1, 1]} : vector<16x160xf32> to vector<16x32xf32>
      %72 = vector.extract_strided_slice %69 {offsets = [0, 64], sizes = [16, 32], strides = [1, 1]} : vector<16x160xf32> to vector<16x32xf32>
      %73 = vector.extract_strided_slice %69 {offsets = [0, 96], sizes = [16, 32], strides = [1, 1]} : vector<16x160xf32> to vector<16x32xf32>
      %74 = vector.extract_strided_slice %69 {offsets = [0, 128], sizes = [16, 32], strides = [1, 1]} : vector<16x160xf32> to vector<16x32xf32>
      %75 = arith.mulf %70, %70 : vector<16x32xf32>
      %76 = arith.mulf %71, %71 : vector<16x32xf32>
      %77 = arith.mulf %70, %71 : vector<16x32xf32>
      %78 = arith.subf %72, %75 : vector<16x32xf32>
      %79 = arith.subf %73, %76 : vector<16x32xf32>
      %80 = arith.subf %74, %77 : vector<16x32xf32>
      %cst_37 = arith.constant 2.000000e+00 : f32
      %81 = vector.broadcast %cst_37 : f32 to vector<16x32xf32>
      %82 = arith.mulf %81, %77 : vector<16x32xf32>
      %cst_38 = arith.constant 9.99999974E-5 : f32
      %83 = vector.broadcast %cst_38 : f32 to vector<16x32xf32>
      %84 = arith.addf %82, %83 : vector<16x32xf32>
      %cst_39 = arith.constant 2.000000e+00 : f32
      %85 = vector.broadcast %cst_39 : f32 to vector<16x32xf32>
      %86 = arith.mulf %85, %80 : vector<16x32xf32>
      %cst_40 = arith.constant 8.99999984E-4 : f32
      %87 = vector.broadcast %cst_40 : f32 to vector<16x32xf32>
      %88 = arith.addf %86, %87 : vector<16x32xf32>
      %89 = arith.mulf %84, %88 : vector<16x32xf32>
      %90 = arith.addf %75, %76 : vector<16x32xf32>
      %cst_41 = arith.constant 9.99999974E-5 : f32
      %91 = vector.broadcast %cst_41 : f32 to vector<16x32xf32>
      %92 = arith.addf %90, %91 : vector<16x32xf32>
      %93 = arith.addf %78, %79 : vector<16x32xf32>
      %cst_42 = arith.constant 8.99999984E-4 : f32
      %94 = vector.broadcast %cst_42 : f32 to vector<16x32xf32>
      %95 = arith.addf %93, %94 : vector<16x32xf32>
      %96 = arith.mulf %92, %95 : vector<16x32xf32>
      %97 = tpu.reciprocal %96 {approx = true} : vector<16x32xf32> -> vector<16x32xf32>
      %98 = arith.mulf %89, %97 : vector<16x32xf32>
      %99 = vector.extract_strided_slice %98 {offsets = [0, 0], sizes = [16, 16], strides = [1, 1]} : vector<16x32xf32> to vector<16x16xf32>
      %100 = vector.shape_cast %99 : vector<16x16xf32> to vector<1x16x16xf32>
      %cst_43 = arith.constant dense<0.000000e+00> : vector<1xf32>
      %101 = vector.multi_reduction <add>, %100, %cst_43 [1, 2] : vector<1x16x16xf32> to vector<1xf32>
      %102 = vector.shape_cast %101 : vector<1xf32> to vector<1x1x1xf32>
      %103 = vector.extract %102[0, 0, 0] : f32 from vector<1x1x1xf32>
      %104 = vector.broadcast %103 : f32 to vector<1x1xf32>
      %105 = vector.extract_strided_slice %98 {offsets = [0, 16], sizes = [16, 16], strides = [1, 1]} : vector<16x32xf32> to vector<16x16xf32>
      %106 = vector.shape_cast %105 : vector<16x16xf32> to vector<1x16x16xf32>
      %cst_44 = arith.constant dense<0.000000e+00> : vector<1xf32>
      %107 = vector.multi_reduction <add>, %106, %cst_44 [1, 2] : vector<1x16x16xf32> to vector<1xf32>
      %108 = vector.shape_cast %107 : vector<1xf32> to vector<1x1x1xf32>
      %109 = vector.extract %108[0, 0, 0] : f32 from vector<1x1x1xf32>
      %110 = vector.broadcast %109 : f32 to vector<1x1xf32>
      %111 = tpu.concatenate %104, %110 in 0 : vector<1x1xf32>, vector<1x1xf32> -> vector<2x1xf32>
      %cst_45 = arith.constant 3.906250e-03 : f32
      %112 = vector.broadcast %cst_45 : f32 to vector<2x1xf32>
      %113 = arith.mulf %111, %112 : vector<2x1xf32>
      %114 = arith.subf %43, %41 : vector<2x16x16xf32>
      %cst_46 = arith.constant 0.000000e+00 : f32
      %115 = vector.broadcast %cst_46 : f32 to vector<2x16x1xf32>
      %116 = vector.extract_strided_slice %114 {offsets = [0, 0, 0], sizes = [2, 16, 15], strides = [1, 1, 1]} : vector<2x16x16xf32> to vector<2x16x15xf32>
      %117 = tpu.concatenate %115, %116 in 2 : vector<2x16x1xf32>, vector<2x16x15xf32> -> vector<2x16x16xf32>
      %118 = arith.addf %114, %117 : vector<2x16x16xf32>
      %119 = vector.extract_strided_slice %114 {offsets = [0, 0, 1], sizes = [2, 16, 15], strides = [1, 1, 1]} : vector<2x16x16xf32> to vector<2x16x15xf32>
      %120 = tpu.concatenate %119, %115 in 2 : vector<2x16x15xf32>, vector<2x16x1xf32> -> vector<2x16x16xf32>
      %121 = arith.addf %118, %120 : vector<2x16x16xf32>
      %cst_47 = arith.constant 0.000000e+00 : f32
      %122 = vector.broadcast %cst_47 : f32 to vector<2x1x16xf32>
      %123 = vector.extract_strided_slice %121 {offsets = [0, 0, 0], sizes = [2, 15, 16], strides = [1, 1, 1]} : vector<2x16x16xf32> to vector<2x15x16xf32>
      %124 = tpu.concatenate %122, %123 in 1 : vector<2x1x16xf32>, vector<2x15x16xf32> -> vector<2x16x16xf32>
      %125 = arith.addf %121, %124 : vector<2x16x16xf32>
      %126 = vector.extract_strided_slice %121 {offsets = [0, 1, 0], sizes = [2, 15, 16], strides = [1, 1, 1]} : vector<2x16x16xf32> to vector<2x15x16xf32>
      %127 = tpu.concatenate %126, %122 in 1 : vector<2x15x16xf32>, vector<2x1x16xf32> -> vector<2x16x16xf32>
      %128 = arith.addf %125, %127 : vector<2x16x16xf32>
      %cst_48 = arith.constant 1.250000e-01 : f32
      %129 = vector.broadcast %cst_48 : f32 to vector<2x16x16xf32>
      %130 = arith.mulf %129, %128 : vector<2x16x16xf32>
      %cst_49 = arith.constant 1.125000e+00 : f32
      %131 = vector.broadcast %cst_49 : f32 to vector<2x16x16xf32>
      %132 = arith.mulf %131, %114 : vector<2x16x16xf32>
      %133 = arith.subf %130, %132 : vector<2x16x16xf32>
      %134 = arith.subf %43, %42 : vector<2x16x16xf32>
      %cst_50 = arith.constant 0.000000e+00 : f32
      %135 = vector.broadcast %cst_50 : f32 to vector<2x16x1xf32>
      %136 = vector.extract_strided_slice %134 {offsets = [0, 0, 0], sizes = [2, 16, 15], strides = [1, 1, 1]} : vector<2x16x16xf32> to vector<2x16x15xf32>
      %137 = tpu.concatenate %135, %136 in 2 : vector<2x16x1xf32>, vector<2x16x15xf32> -> vector<2x16x16xf32>
      %138 = arith.addf %134, %137 : vector<2x16x16xf32>
      %139 = vector.extract_strided_slice %134 {offsets = [0, 0, 1], sizes = [2, 16, 15], strides = [1, 1, 1]} : vector<2x16x16xf32> to vector<2x16x15xf32>
      %140 = tpu.concatenate %139, %135 in 2 : vector<2x16x15xf32>, vector<2x16x1xf32> -> vector<2x16x16xf32>
      %141 = arith.addf %138, %140 : vector<2x16x16xf32>
      %cst_51 = arith.constant 0.000000e+00 : f32
      %142 = vector.broadcast %cst_51 : f32 to vector<2x1x16xf32>
      %143 = vector.extract_strided_slice %141 {offsets = [0, 0, 0], sizes = [2, 15, 16], strides = [1, 1, 1]} : vector<2x16x16xf32> to vector<2x15x16xf32>
      %144 = tpu.concatenate %142, %143 in 1 : vector<2x1x16xf32>, vector<2x15x16xf32> -> vector<2x16x16xf32>
      %145 = arith.addf %141, %144 : vector<2x16x16xf32>
      %146 = vector.extract_strided_slice %141 {offsets = [0, 1, 0], sizes = [2, 15, 16], strides = [1, 1, 1]} : vector<2x16x16xf32> to vector<2x15x16xf32>
      %147 = tpu.concatenate %146, %142 in 1 : vector<2x15x16xf32>, vector<2x1x16xf32> -> vector<2x16x16xf32>
      %148 = arith.addf %145, %147 : vector<2x16x16xf32>
      %cst_52 = arith.constant 1.250000e-01 : f32
      %149 = vector.broadcast %cst_52 : f32 to vector<2x16x16xf32>
      %150 = arith.mulf %149, %148 : vector<2x16x16xf32>
      %cst_53 = arith.constant 1.125000e+00 : f32
      %151 = vector.broadcast %cst_53 : f32 to vector<2x16x16xf32>
      %152 = arith.mulf %151, %134 : vector<2x16x16xf32>
      %153 = arith.subf %150, %152 : vector<2x16x16xf32>
      %154 = arith.mulf %133, %133 : vector<2x16x16xf32>
      %cst_54 = arith.constant dense<0.000000e+00> : vector<2x16xf32>
      %155 = vector.multi_reduction <add>, %154, %cst_54 [2] : vector<2x16x16xf32> to vector<2x16xf32>
      %cst_55 = arith.constant dense<0.000000e+00> : vector<2xf32>
      %156 = vector.multi_reduction <add>, %155, %cst_55 [1] : vector<2x16xf32> to vector<2xf32>
      %157 = vector.shape_cast %156 : vector<2xf32> to vector<2x1xf32>
      %cst_56 = arith.constant 3.906250e-03 : f32
      %158 = vector.broadcast %cst_56 : f32 to vector<2x1xf32>
      %159 = arith.mulf %157, %158 : vector<2x1xf32>
      %160 = arith.mulf %153, %153 : vector<2x16x16xf32>
      %cst_57 = arith.constant dense<0.000000e+00> : vector<2x16xf32>
      %161 = vector.multi_reduction <add>, %160, %cst_57 [2] : vector<2x16x16xf32> to vector<2x16xf32>
      %cst_58 = arith.constant dense<0.000000e+00> : vector<2xf32>
      %162 = vector.multi_reduction <add>, %161, %cst_58 [1] : vector<2x16xf32> to vector<2xf32>
      %163 = vector.shape_cast %162 : vector<2xf32> to vector<2x1xf32>
      %cst_59 = arith.constant 3.906250e-03 : f32
      %164 = vector.broadcast %cst_59 : f32 to vector<2x1xf32>
      %165 = arith.mulf %163, %164 : vector<2x1xf32>
      %166 = tpu.iota {dimensions = array<i32: 1>} : vector<2x128xi32>
      %c0_i32_60 = arith.constant 0 : i32
      %167 = vector.broadcast %c0_i32_60 : i32 to vector<2x128xi32>
      %168 = arith.cmpi eq, %166, %167 : vector<2x128xi32>
      %cst_61 = arith.constant 0.000000e+00 : f32
      %169 = vector.shape_cast %113 : vector<2x1xf32> to vector<2x1xf32>
      %170 = vector.broadcast %169 : vector<2x1xf32> to vector<2x128xf32>
      %171 = vector.broadcast %cst_61 : f32 to vector<2x128xf32>
      %172 = arith.select %168, %170, %171 : vector<2x128xi1>, vector<2x128xf32>
      %c1_i32 = arith.constant 1 : i32
      %173 = vector.broadcast %c1_i32 : i32 to vector<2x128xi32>
      %174 = arith.cmpi eq, %166, %173 : vector<2x128xi32>
      %cst_62 = arith.constant 0.000000e+00 : f32
      %175 = vector.shape_cast %159 : vector<2x1xf32> to vector<2x1xf32>
      %176 = vector.broadcast %175 : vector<2x1xf32> to vector<2x128xf32>
      %177 = vector.broadcast %cst_62 : f32 to vector<2x128xf32>
      %178 = arith.select %174, %176, %177 : vector<2x128xi1>, vector<2x128xf32>
      %179 = arith.addf %172, %178 : vector<2x128xf32>
      %c2_i32 = arith.constant 2 : i32
      %180 = vector.broadcast %c2_i32 : i32 to vector<2x128xi32>
      %181 = arith.cmpi eq, %166, %180 : vector<2x128xi32>
      %cst_63 = arith.constant 0.000000e+00 : f32
      %182 = vector.shape_cast %165 : vector<2x1xf32> to vector<2x1xf32>
      %183 = vector.broadcast %182 : vector<2x1xf32> to vector<2x128xf32>
      %184 = vector.broadcast %cst_63 : f32 to vector<2x128xf32>
      %185 = arith.select %181, %183, %184 : vector<2x128xi1>, vector<2x128xf32>
      %186 = arith.addf %179, %185 : vector<2x128xf32>
      %187 = vector.shape_cast %186 : vector<2x128xf32> to vector<1x2x128xf32>
      %c0_64 = arith.constant 0 : index
      %c0_65 = arith.constant 0 : index
      %c0_66 = arith.constant 0 : index
      %188 = vector.load %arg11[%c0_64, %c0_65, %c0_66] : memref<1x2x128xf32, #tpu.memory_space<vmem>>, vector<1x2x128xf32>
      tpu.vector_store %arg11[%c0_64, %c0_65, %c0_66], %187 {strides = array<i32>} : memref<1x2x128xf32, #tpu.memory_space<vmem>>, vector<1x2x128xf32>,
    } else {
    }
    %c0 = arith.constant 0 : index
    %c0_1 = arith.constant 0 : index
    %c0_2 = arith.constant 0 : index
    %3 = vector.load %arg7[%c0, %c0_1, %c0_2] : memref<2x8x128xf32, #tpu.memory_space<vmem>>, vector<2x8x128xf32>
    %c0_3 = arith.constant 0 : index
    %c0_4 = arith.constant 0 : index
    %c0_5 = arith.constant 0 : index
    %4 = vector.load %arg8[%c0_3, %c0_4, %c0_5] : memref<2x8x128xf32, #tpu.memory_space<vmem>>, vector<2x8x128xf32>
    %c0_6 = arith.constant 0 : index
    %c0_7 = arith.constant 0 : index
    %c0_8 = arith.constant 0 : index
    %5 = vector.load %arg9[%c0_6, %c0_7, %c0_8] : memref<2x8x128xf32, #tpu.memory_space<vmem>>, vector<2x8x128xf32>
    %c0_9 = arith.constant 0 : index
    %c0_10 = arith.constant 0 : index
    %6 = vector.load %arg10[%c0_9, %c0_10] : memref<8x128xf32, #tpu.memory_space<vmem>>, vector<8x128xf32>
    %7 = arith.subf %3, %4 : vector<2x8x128xf32>
    %8 = arith.subf %3, %5 : vector<2x8x128xf32>
    %9 = vector.shape_cast %6 : vector<8x128xf32> to vector<1x8x128xf32>
    %10 = vector.broadcast %9 : vector<1x8x128xf32> to vector<2x8x128xf32>
    %11 = arith.mulf %10, %7 : vector<2x8x128xf32>
    %12 = arith.mulf %11, %7 : vector<2x8x128xf32>
    %cst = arith.constant dense<0.000000e+00> : vector<2x8xf32>
    %13 = vector.multi_reduction <add>, %12, %cst [2] : vector<2x8x128xf32> to vector<2x8xf32>
    %cst_11 = arith.constant dense<0.000000e+00> : vector<2xf32>
    %14 = vector.multi_reduction <add>, %13, %cst_11 [1] : vector<2x8xf32> to vector<2xf32>
    %15 = vector.shape_cast %14 : vector<2xf32> to vector<2x1xf32>
    %16 = vector.shape_cast %6 : vector<8x128xf32> to vector<1x8x128xf32>
    %17 = vector.broadcast %16 : vector<1x8x128xf32> to vector<2x8x128xf32>
    %18 = arith.mulf %17, %8 : vector<2x8x128xf32>
    %19 = arith.mulf %18, %8 : vector<2x8x128xf32>
    %cst_12 = arith.constant dense<0.000000e+00> : vector<2x8xf32>
    %20 = vector.multi_reduction <add>, %19, %cst_12 [2] : vector<2x8x128xf32> to vector<2x8xf32>
    %cst_13 = arith.constant dense<0.000000e+00> : vector<2xf32>
    %21 = vector.multi_reduction <add>, %20, %cst_13 [1] : vector<2x8xf32> to vector<2xf32>
    %22 = vector.shape_cast %21 : vector<2xf32> to vector<2x1xf32>
    %23 = tpu.iota {dimensions = array<i32: 1>} : vector<2x128xi32>
    %c3_i32 = arith.constant 3 : i32
    %24 = vector.broadcast %c3_i32 : i32 to vector<2x128xi32>
    %25 = arith.cmpi eq, %23, %24 : vector<2x128xi32>
    %cst_14 = arith.constant 0.000000e+00 : f32
    %26 = vector.shape_cast %15 : vector<2x1xf32> to vector<2x1xf32>
    %27 = vector.broadcast %26 : vector<2x1xf32> to vector<2x128xf32>
    %28 = vector.broadcast %cst_14 : f32 to vector<2x128xf32>
    %29 = arith.select %25, %27, %28 : vector<2x128xi1>, vector<2x128xf32>
    %c4_i32 = arith.constant 4 : i32
    %30 = vector.broadcast %c4_i32 : i32 to vector<2x128xi32>
    %31 = arith.cmpi eq, %23, %30 : vector<2x128xi32>
    %cst_15 = arith.constant 0.000000e+00 : f32
    %32 = vector.shape_cast %22 : vector<2x1xf32> to vector<2x1xf32>
    %33 = vector.broadcast %32 : vector<2x1xf32> to vector<2x128xf32>
    %34 = vector.broadcast %cst_15 : f32 to vector<2x128xf32>
    %35 = arith.select %31, %33, %34 : vector<2x128xi1>, vector<2x128xf32>
    %36 = arith.addf %29, %35 : vector<2x128xf32>
    %c0_16 = arith.constant 0 : index
    %c0_17 = arith.constant 0 : index
    %c0_18 = arith.constant 0 : index
    %37 = vector.load %arg11[%c0_16, %c0_17, %c0_18] : memref<1x2x128xf32, #tpu.memory_space<vmem>>, vector<1x2x128xf32>
    %38 = vector.shape_cast %36 : vector<2x128xf32> to vector<1x2x128xf32>
    %39 = arith.addf %37, %38 : vector<1x2x128xf32>
    %c0_19 = arith.constant 0 : index
    %c0_20 = arith.constant 0 : index
    %c0_21 = arith.constant 0 : index
    %40 = vector.load %arg11[%c0_19, %c0_20, %c0_21] : memref<1x2x128xf32, #tpu.memory_space<vmem>>, vector<1x2x128xf32>
    tpu.vector_store %arg11[%c0_19, %c0_20, %c0_21], %39 {strides = array<i32>} : memref<1x2x128xf32, #tpu.memory_space<vmem>>, vector<1x2x128xf32>,
    return
  }
  func.func @transform_0(%arg0: i32, %arg1: i32) -> (i32, i32, i32) {
    %c0_i32 = arith.constant 0 : i32
    %c0_i32_0 = arith.constant 0 : i32
    %c0_i32_1 = arith.constant 0 : i32
    return %arg0, %c0_i32, %c0_i32_0 : i32, i32, i32
  }
  func.func @transform_1(%arg0: i32, %arg1: i32) -> (i32, i32, i32) {
    %c0_i32 = arith.constant 0 : i32
    %c0_i32_0 = arith.constant 0 : i32
    %c0_i32_1 = arith.constant 0 : i32
    return %arg0, %c0_i32, %c0_i32_0 : i32, i32, i32
  }
  func.func @transform_2(%arg0: i32, %arg1: i32) -> (i32, i32, i32) {
    %c0_i32 = arith.constant 0 : i32
    %c0_i32_0 = arith.constant 0 : i32
    %c0_i32_1 = arith.constant 0 : i32
    return %arg0, %c0_i32, %c0_i32_0 : i32, i32, i32
  }
  func.func @transform_3(%arg0: i32, %arg1: i32) -> (i32, i32) {
    %c0_i32 = arith.constant 0 : i32
    %c0_i32_0 = arith.constant 0 : i32
    %c0_i32_1 = arith.constant 0 : i32
    return %c0_i32, %c0_i32_0 : i32, i32
  }
  func.func @transform_4(%arg0: i32, %arg1: i32) -> (i32, i32) {
    %c0_i32 = arith.constant 0 : i32
    %c0_i32_0 = arith.constant 0 : i32
    %c0_i32_1 = arith.constant 0 : i32
    return %c0_i32, %c0_i32_0 : i32, i32
  }
  func.func @transform_5(%arg0: i32, %arg1: i32) -> (i32, i32, i32) {
    %c0_i32 = arith.constant 0 : i32
    %c0_i32_0 = arith.constant 0 : i32
    return %arg0, %arg1, %c0_i32 : i32, i32, i32
  }
  func.func @transform_6(%arg0: i32, %arg1: i32) -> (i32, i32, i32) {
    %c0_i32 = arith.constant 0 : i32
    %c0_i32_0 = arith.constant 0 : i32
    return %arg0, %arg1, %c0_i32 : i32, i32, i32
  }
  func.func @transform_7(%arg0: i32, %arg1: i32) -> (i32, i32, i32) {
    %c0_i32 = arith.constant 0 : i32
    %c0_i32_0 = arith.constant 0 : i32
    return %arg0, %arg1, %c0_i32 : i32, i32, i32
  }
  func.func @transform_8(%arg0: i32, %arg1: i32) -> (i32, i32) {
    %c0_i32 = arith.constant 0 : i32
    %c0_i32_0 = arith.constant 0 : i32
    return %arg1, %c0_i32 : i32, i32
  }
  func.func @transform_9(%arg0: i32, %arg1: i32) -> (i32, i32, i32) {
    %c0_i32 = arith.constant 0 : i32
    %c0_i32_0 = arith.constant 0 : i32
    %c0_i32_1 = arith.constant 0 : i32
    return %arg0, %c0_i32, %c0_i32_0 : i32, i32, i32
  }
}

</mosaic_0001>

<bundles_post_ra>
// kernel: tpu_custom_call.1
= control target key start
LH: loop header
LB: loop body
LE: loop exit
PB: predicated region body
PF: predicated region fallthrough
CT: control target
= control target key end

     0   :  { %s3128_s0 = inlined_call_operand.hbm [shape: f32[4,16,16], index: 0, kind: input, shape index: {}]   ;;  %s3129_s1 = inlined_call_operand.hbm [shape: f32[4,16,16], index: 1, kind: input, shape index: {}]   ;;  %s3130_s2 = inlined_call_operand.hbm [shape: f32[4,16,16], index: 2, kind: input, shape index: {}]   ;;  %s3131_s3 = inlined_call_operand.hbm [shape: bf16[16,16], index: 3, kind: input, shape index: {}]   ;;  %s3132_s4 = inlined_call_operand.hbm [shape: bf16[16,16], index: 4, kind: input, shape index: {}]   ;;  %s3133_s5 = inlined_call_operand.hbm [shape: f32[4,16,128], index: 5, kind: input, shape index: {}]   ;;  %s3134_s6 = inlined_call_operand.hbm [shape: f32[4,16,128], index: 6, kind: input, shape index: {}]   ;;  %s3135_s7 = inlined_call_operand.hbm [shape: f32[4,16,128], index: 7, kind: input, shape index: {}]   ;;  %s3136_s8 = inlined_call_operand.hbm [shape: f32[16,128], index: 8, kind: input, shape index: {}]   ;;  %s3137_s9 = inlined_call_operand.hbm [shape: f32[2,2,128], index: 9, kind: output, shape index: {}]  }
   0x1   :  { %3175 = sst [smem:[#allocation45_spill]] %s3128_s0 }
   0x2   :  { %3176 = sst [smem:[#allocation46_spill]] %s3129_s1 }
   0x3   :  { %3177 = sst [smem:[#allocation47_spill]] %s3131_s3 }
   0x4   :  { %3178 = sst [smem:[#allocation48_spill]] %s3133_s5 }
   0x5   :  { %3179 = sst [smem:[#allocation49_spill]] %s3134_s6 }
   0x6   :  { %3180 = sst [smem:[#allocation50_spill]] %s3136_s8 }
   0x7   :  { %3181 = sst [smem:[#allocation51_spill]] %s3137_s9 }
   0x8   :  { %14 = vsyncpa [#allocation3], 0 }
   0x9   :  { %16 = vsyncpa [#allocation3 + $0x1], 0 }
   0xa   :  { %17 = vsyncpa [#allocation6], 0 }
   0xb   :  { %19 = vsyncpa [#allocation6 + $0x1], 0 }
   0xc   :  { %20 = vsyncpa [#allocation9], 0 }
   0xd   :  { %21 = vsyncpa [#allocation12], 0 }
   0xe   :  { %23 = vsyncpa [#allocation12 + $0x1], 0 }
   0xf   :  { %24 = vsyncpa [#allocation15], 0 }
  0x10   :  { %26 = vsyncpa [#allocation15 + $0x1], 0 }
  0x11   :  { %27 = vsyncpa [#allocation4], 0 }
  0x12   :  { %29 = vsyncpa [#allocation4 + $0x1], 0  ;;  %s2428_s30 = smov 0   ;;  %s2430_s10 = smov 0  }
  0x13   :  { %s2432_s11 = smov 0   ;;  %s2434_s12 = smov 0  }
  0x14   :  { %s2436_s13 = smov 0   ;;  %s2438_s14 = smov 0  }
  0x15   :  { %s2440_s15 = smov 0   ;;  %s2442_s16 = smov 0  }
  0x16   :  { %s2444_s17 = smov 0   ;;  %s2446_s18 = smov 0  }
  0x17   :  { %s2448_s19 = smov 0   ;;  %s2450_s20 = smov 0  }
  0x18   :  { %s2452_s21 = smov 0   ;;  %s2454_s22 = smov 0  }
  0x19 LB: > { %3182 = sst [smem:[#allocation25_spill]] %s2307_s30  ;;  %s2499_s23 = sadd.s32 4294967295, %s2359_s22   ;;  %s2359_s22 = sphi %s2454_s22, %s35_s22   ;;  %s2355_s21 = sphi %s2452_s21, %s3263_s21   ;;  %s2351_s20 = sphi %s2450_s20, %s3271_s20   ;;  %s2347_s19 = sphi %s2448_s19, %s3262_s19   ;;  %s2343_s18 = sphi %s2446_s18, %s3270_s18   ;;  %s2339_s17 = sphi %s2444_s17, %s3269_s17   ;;  %s2335_s16 = sphi %s2442_s16, %s3268_s16   ;;  %s2331_s15 = sphi %s2440_s15, %s3267_s15   ;;  %s2327_s14 = sphi %s2438_s14, %s3266_s14   ;;  %s2323_s13 = sphi %s2436_s13, %s3259_s13   ;;  %s2319_s12 = sphi %s2434_s12, %s3258_s12   ;;  %s2315_s11 = sphi %s2432_s11, %s3265_s11   ;;  %s2311_s10 = sphi %s2430_s10, %s3264_s10   ;;  %s2307_s30 = sphi %s2428_s30, %s3257_s30  }
  0x1a   : > { %3183 = sst [smem:[#allocation26_spill]] %s2311_s10  ;;  %p1642_p0 = scmp.ge.s32.totalorder %s2359_s22, 1 }
  0x1b   : > { %3184 = sst [smem:[#allocation27_spill]] %s2323_s13  ;;  %p68_p1 = scmp.eq.s32.totalorder %s2499_s23, 0 }
  0x1c   : > { %3185 = sst [smem:[#allocation28_spill]] %s2327_s14  ;;  %p308_p2 = scmp.lt.s32.totalorder %s2359_s22, 5 }
  0x1d   : > { %3186 = sst [smem:[#allocation29_spill]] %s2331_s15  ;;  %s2361_s28 = smov [#allocation8]  }
  0x1e   : > { %3187 = sst [smem:[#allocation30_spill]] %s2335_s16  ;;  %p2507_p3 = pnand %p1642_p0, %p308_p2 }
  0x1f   : > { %3188 = sst [smem:[#allocation31_spill]] %s2343_s18  ;;  %s321_s29 = sshll.u32 %s2361_s28, 4  ;;  %s322_s29 = int_to_ptr.vmem [resolvable:$true] %s321_s29 }
  0x20   : > { %3189 = sst [smem:[#allocation32_spill]] %s2347_s19  ;;  %p1750_p4 = pneg %p2507_p3 }
  0x21   : > { %3190 = sst [smem:[#allocation33_spill]] %s2355_s21  ;;  %s3139_s25 = smov 64  }
  0x22   : > { %3191 = sst [smem:[#allocation34_spill]] %s2359_s22  ;;  %p2515_p5 = pnand %p1750_p4, %p68_p1 }
  0x23   : > { %3192 = sst [smem:[#allocation35_spill]] %s2499_s23  ;;  %s1641_s9 = sadd.s32 4294967294, %s2359_s22  }
  0x24   : > { %s3193_s3 = sld [smem:[#allocation47_spill]]  ;;  %p61_p6 = scmp.ne.s32.totalorder %s2339_s17, %s2335_s16 }
  0x25   : > { %s3194_s27 = scalar_select %p2507_p3, 1, 0 }
  0x26   : > { %p62_p7 = scmp.eq.s32.totalorder %s2359_s22, 0  ;;  %p67_p8 = scmp.ne.s32.totalorder %s2335_s16, %s2331_s15 }
  0x27   : > { %3195 = sst [smem:[#allocation36_spill]] %s3194_s27  ;;  %p295_p9 = scmp.eq.s32.totalorder %s2499_s23, 3 }
  0x28   : > { %p63_p10 = por %p62_p7, %p61_p6  ;;  %p301_p11 = scmp.eq.s32.totalorder %s1641_s9, 3 }
  0x29   : > { %p2537_p12 = por %p68_p1, %p67_p8  ;;  %p2541_p13 = por %p295_p9, %p61_p6 }
  0x2a   : > { %s319_s26 = sshll.u32 %s3193_s3, 4  ;;  %s3140_s3 = smov 4   ;;  %s320_s26 = int_to_ptr.hbm [resolvable:$true] %s319_s26 }
  0x2b   : > { %1753 = dma.hbm_to_vmem [thread:$0]  (!%p2515_p5), %s320_s26, 128, %s322_s29, [#allocation9], %s3139_s25, %s3139_s25, %s3140_s3  }
  0x2c   : > { %s3197_s18 = scalar_select %p2537_p12, 1, 0 }
  0x2d   : > { %s3199_s26 = scalar_select %p2541_p13, 1, 0 }
  0x2e   : > { %3198 = sst [smem:[#allocation37_spill]] %s3197_s18  ;;  %p2545_p0 = por %p301_p11, %p67_p8 }
  0x2f   : > { %3200 = sst [smem:[#allocation38_spill]] %s3199_s26  ;;  %p3150_p2 = scmp.lt.s32.totalorder %s2359_s22, 4 }
  0x30   : > { %s3201_s29 = scalar_select %p2545_p0, 1, 0 }
  0x31   : > { %s3143_s25 = sand.u32 1, %s2339_s17   ;;  %s2552_s3 = sshll.u32 %s2355_s21, 5 }
  0x32   : > { %3202 = sst [smem:[#allocation39_spill]] %s3201_s29  ;;  %s2556_s9 = sshll.u32 %s3143_s25, 5 }
  0x33   : > { %p2560_p4 = pnand %p3150_p2, %p63_p10  ;;  %s2565_s28 = sand.u32 1, %s2359_s22  }
  0x34   : > { %s3204_s1 = sld [smem:[#allocation46_spill]]  ;;  %s376_s26 = scalar_lea.vmem [#allocation5], %s2556_s9 }
  0x35   : > { %s385_s18 = sshll.u32 %s376_s26, 4  ;;  %s3152_s27 = scalar_lea.sflag [#allocation6], %s2565_s28  ;;  %s386_s18 = int_to_ptr.vmem [resolvable:$true] %s385_s18 }
  0x36   : > { %s3153_s8 = smov 128   ;;  %s3155_s6 = smov 8  }
  0x37   : > { %s3151_s15 = sadd.s32 1, %s2351_s20  ;;  %p183_p8 = scmp.ne.s32.totalorder %s2327_s14, %s2323_s13 }
  0x38   : > { %p2583_p6 = scmp.ge.s32.totalorder %s3151_s15, 2  ;;  %p189_p9 = scmp.ne.s32.totalorder %s2323_s13, %s2319_s12 }
  0x39   : > { %s3207_s29 = sadd.s32 1, %s2355_s21  ;;  %p2599_p10 = por %p183_p8, %p62_p7 }
  0x3a   : > { %s382_s25 = scalar_lea.hbm %s3204_s1, %s2552_s3  ;;  %s3273_s29 = smov (!%p2583_p6, %s3207_s29), %s2355_s21 }
  0x3b   : > { %s383_s16 = sshll.u32 %s382_s25, 4  ;;  %p2605_p11 = por %p189_p9, %p68_p1  ;;  %s384_s16 = int_to_ptr.hbm [resolvable:$true] %s383_s16 }
  0x3c   : > { %1763 = dma.hbm_to_vmem [thread:$0]  (!%p2560_p4), %s384_s16, 512, %s386_s18, %s3152_s27, %s3153_s8, %s3153_s8, %s3155_s6  }
  0x3d   : > { %s3205_s26 = scalar_select %p2583_p6, 1, 0 }
  0x3e   : > { %s3209_s16 = scalar_select %p2605_p11, 1, 0 }
  0x3f   : > { %3206 = sst [smem:[#allocation40_spill]] %s3205_s26  ;;  %p49_p2 = scmp.ge.s32.totalorder %s3273_s29, 2 }
  0x40   : > { %3210 = sst [smem:[#allocation41_spill]] %s3209_s16  ;;  %s420_s18 = sand.u32 1, %s2327_s14  }
  0x41   : > { %s1714_s12 = sshll.u32 %s2355_s21, 2  ;;  %s3275_s29 = smov (%p49_p2, %s3273_s29), 0 }
  0x42   : > { %3211 = sst [smem:[#allocation42_spill]] %s3275_s29  ;;  %s2613_s25 = sshll.u32 %s420_s18, 4 }
  0x43   : > { %s427_s15 = sadd.s32 %s2351_s20, %s1714_s12  ;;  %s2618_s27 = ssub.s32 %s2355_s21, %s3275_s29 }
  0x44   : > { %3212 = sst [smem:[#allocation43_spill]] %s2618_s27  ;;  %p52_p8 = scmp.eq.s32.totalorder %s2618_s27, 0 }
  0x45   : > { %s2621_s8 = sshll.u32 %s427_s15, 3  ;;  %s3213_s5 = sld [smem:[#allocation48_spill]] }
  0x46   : > { %s422_s23 = scalar_lea.vmem [#allocation11], %s2613_s25  ;;  %s3214_s30 = sadd.s32 1, %s2339_s17 }
  0x47   : > { %s432_s14 = sshll.u32 %s422_s23, 4  ;;  %p3216_p2 = scmp.lt.s32.totalorder %s2359_s22, 4  ;;  %s433_s14 = int_to_ptr.vmem [resolvable:$true] %s432_s14 }
  0x48   : > { %s2631_s18 = scalar_select %p52_p8, %s2339_s17, %s3214_s30  }
  0x49   : > { %p2637_p9 = pnand %p3216_p2, %p2599_p10  ;;  %s3172_s6 = scalar_lea.sflag [#allocation12], %s2565_s28 }
  0x4a   : > { %3215 = sst [smem:[#allocation44_spill]] %s2631_s18  ;;  %s3174_s16 = smov 256  }
  0x4b   : > { %s429_s13 = scalar_lea.hbm %s3213_s5, %s2621_s8  ;;  %s3218_s23 = smov 8  }
  0x4c   : > { %s430_s12 = sshll.u32 %s429_s13, 4  ;;  %s3219_s5 = smov 128   ;;  %s431_s12 = int_to_ptr.hbm [resolvable:$true] %s430_s12 }
  0x4d   : > { %1769 = dma.hbm_to_vmem [thread:$0]  (!%p2637_p9), %s431_s12, 256, %s433_s14, %s3172_s6, %s3174_s16, %s3219_s5, %s3218_s23  }
  0x4e   : > { %s477_s1 = scalar_lea.hbm %s3135_s7, %s2621_s8  ;;  %s470_s29 = scalar_lea.vmem [#allocation14], %s2613_s25 }
  0x4f   : > { %s480_s21 = sshll.u32 %s470_s29, 4  ;;  %s478_s18 = sshll.u32 %s477_s1, 4  ;;  %s481_s21 = int_to_ptr.vmem [resolvable:$true] %s480_s21  ;;  %s479_s18 = int_to_ptr.hbm [resolvable:$true] %s478_s18 }
  0x50   : > { %s333_s10 = sshll.u32 %s3132_s4, 4  ;;  %s3173_s26 = scalar_lea.sflag [#allocation15], %s2565_s28  ;;  %s334_s10 = int_to_ptr.hbm [resolvable:$true] %s333_s10 }
  0x51   : > { %1775 = dma.hbm_to_vmem [thread:$0]  (!%p2637_p9), %s479_s18, 256, %s481_s21, %s3173_s26, %s3174_s16, %s3219_s5, %s3218_s23  }
  0x52   : > { %s2367_s14 = smov [#allocation10]   ;;  %s3220_s12 = smov 4  }
  0x53   : > { %s335_s29 = sshll.u32 %s2367_s14, 4  ;;  %s3221_s30 = smov 64   ;;  %s336_s29 = int_to_ptr.vmem [resolvable:$true] %s335_s29 }
  0x54   : > { %1756 = dma.hbm_to_vmem [thread:$0]  (!%p2515_p5), %s334_s10, 128, %s336_s29, [#allocation9], %s3221_s30, %s3221_s30, %s3220_s12  }
  0x55   : > { %s3222_s0 = sld [smem:[#allocation45_spill]]  ;;  %s353_s1 = scalar_lea.vmem [#allocation2], %s2556_s9 }
  0x56   : > { %s362_s6 = sshll.u32 %s353_s1, 4  ;;  %s3223_s18 = sand.u32 1, %s2339_s17   ;;  %s363_s6 = int_to_ptr.vmem [resolvable:$true] %s362_s6 }
  0x57   : > { %s350_s24 = scalar_lea.sflag [#allocation3], %s3223_s18  ;;  %s405_s12 = scalar_lea.hbm %s3130_s2, %s2552_s3 }
  0x58   : > { %s3225_s30 = sld [smem:[#allocation26_spill]]  ;;  %s399_s22 = scalar_lea.vmem [#allocation7], %s2556_s9 }
  0x59   : > { %s3226_s27 = sld [smem:[#allocation25_spill]]  ;;  %s406_s1 = sshll.u32 %s405_s12, 4  ;;  %s407_s1 = int_to_ptr.hbm [resolvable:$true] %s406_s1 }
  0x5a   : > { %s3227_s18 = sld [smem:[#allocation43_spill]]  ;;  %s446_s14 = scalar_lea.vmem [#allocation13], %s2613_s25 }
  0x5b   : > { %s359_s13 = scalar_lea.hbm %s3222_s0, %s2552_s3  ;;  %s3230_s9 = sld [smem:[#allocation34_spill]] }
  0x5c   : > { %s360_s21 = sshll.u32 %s359_s13, 4  ;;  %s408_s13 = sshll.u32 %s399_s22, 4  ;;  %s361_s21 = int_to_ptr.hbm [resolvable:$true] %s360_s21  ;;  %s409_s13 = int_to_ptr.vmem [resolvable:$true] %s408_s13 }
  0x5d   : > { %1760 = dma.hbm_to_vmem [thread:$0]  (!%p2560_p4), %s361_s21, 512, %s363_s6, %s350_s24, %s3219_s5, %s3219_s5, %s3218_s23  }
  0x5e   : > { %s3228_s6 = scalar_lea.sflag [#allocation6], %s2565_s28  ;;  %s3229_s24 = sld [smem:[#allocation49_spill]] }
  0x5f   : > { %1766 = dma.hbm_to_vmem [thread:$0]  (!%p2560_p4), %s407_s1, 512, %s409_s13, %s3228_s6, %s3219_s5, %s3219_s5, %s3218_s23  }
  0x60   : > { %s456_s22 = sshll.u32 %s446_s14, 4  ;;  %s3231_s26 = sld [smem:[#allocation28_spill]]  ;;  %s457_s22 = int_to_ptr.vmem [resolvable:$true] %s456_s22 }
  0x61   : > { %s3233_s19 = smov 256   ;;  %s3234_s0 = scalar_lea.sflag [#allocation12], %s2565_s28 }
  0x62   : > { %s258_s13 = sadd.s32 1, %s2315_s11  ;;  %s3235_s1 = sadd.s32 1, %s2351_s20 }
  0x63   : > { %s3277_s1 = smov (%p2583_p6, %s3235_s1), 0  ;;  %p265_p5 = scmp.ne.s32.totalorder %s2315_s11, %s3225_s30 }
  0x64   : > { %s453_s10 = scalar_lea.hbm %s3229_s24, %s2621_s8  ;;  %p271_p4 = scmp.ne.s32.totalorder %s3225_s30, %s3226_s27 }
  0x65   : > { %s454_s12 = sshll.u32 %s453_s10, 4  ;;  %s172_s8 = ssub.s32 %s2351_s20, %s3277_s1  ;;  %s455_s12 = int_to_ptr.hbm [resolvable:$true] %s454_s12 }
  0x66   : > { %1772 = dma.hbm_to_vmem [thread:$0]  (!%p2637_p9), %s455_s12, 256, %s457_s22, %s3234_s0, %s3233_s19, %s3219_s5, %s3218_s23  }
  0x67   : > { %s492_s25 = sand.u32 1, %s2315_s11   ;;  %s173_s6 = sor.u32 %s172_s8, %s3227_s18 }
  0x68   : > { %p256_p10 = scmp.eq.s32.totalorder %s172_s8, 0  ;;  %p174_p8 = scmp.eq.s32.totalorder %s173_s6, 0 }
  0x69   : > { %p267_p2 = por %p265_p5, %p62_p7  ;;  %s3236_s0 = sadd.s32 1, %s3231_s26 }
  0x6a   : > { %s2724_s15 = scalar_select %p256_p10, %s2315_s11, %s258_s13  }
  0x6b   : > { %s3279_s26 = smov (!%p174_p8, %s3231_s26), %s3236_s0  ;;  %p2733_p6 = por %p271_p4, %p68_p1 }
  0x6c   : > { %s1670_s23 = sshll.u32 %s492_s25, 3  ;;  %s1671_s29 = sshll.u32 %s2351_s20, 3 }
  0x6d   : > { %s3238_s18 = sld [smem:[#allocation50_spill]]  ;;  %s494_s3 = scalar_lea.vmem [#allocation16], %s1670_s23 }
  0x6e   : > { %s502_s24 = sshll.u32 %s494_s3, 4  ;;  %p3239_p7 = scmp.lt.s32.totalorder %s3230_s9, 4  ;;  %s503_s24 = int_to_ptr.vmem [resolvable:$true] %s502_s24 }
  0x6f   : > { %s3240_s14 = scalar_lea.sflag [#allocation15], %s2565_s28  ;;  %s3242_s22 = sld [smem:[#allocation30_spill]] (!%p2507_p3) }
  0x70   : > { %p1776_p9 = pnand %p3239_p7, %p267_p2 }
  0x71   : > { %511 = sbr.rel (%p2507_p3) target bundleno = 1721 (0x6b9), region = 56 }
  0x73   : > { %s498_s21 = scalar_lea.hbm %s3238_s18, %s1671_s29 }
  0x74   : > { %s500_s10 = sshll.u32 %s498_s21, 4  ;;  %s501_s10 = int_to_ptr.hbm [resolvable:$true] %s500_s10 }
  0x75   : > { %1778 = dma.hbm_to_vmem [thread:$0]  (!%p1776_p9), %s501_s10, 128, %s503_s24, %s3240_s14  }
  0x76   : > { %s2748_s19 = sand.u32 1, %s3242_s22  }
  0x77   : > { %s1673_s13 = sshll.u32 %s2748_s19, 5  ;;  %s514_s8 = scalar_lea.sflag [#allocation3], %s2748_s19 }
  0x78   : > { %s2752_s25 = scalar_lea.vmem [#allocation2], %s1673_s13 }
  0x79   : > { %2278 = dma.done.wait (%p2537_p12), %s514_s8, 512  }
  0x7a   : > { %2280 = vsyncadd (%p2537_p12), %s514_s8, 4294966784  ;;  %s3244_s28 = sld [smem:[#allocation35_spill]]  ;;  %s2759_s0 = scalar_lea.vmem [#allocation5], %s1673_s13 }
  0x80   : > { %s523_s9 = sand.u32 1, %s3244_s28  }
  0x81   : > { %s524_s6 = scalar_lea.sflag [#allocation6], %s523_s9 }
  0x82   : > { %2282 = dma.done.wait (%p2537_p12), %s524_s6, 1024  }
  0x83   : > { %2284 = vsyncadd (%p2537_p12), %s524_s6, 4294966272  ;;  %s2765_s23 = scalar_lea.vmem [#allocation7], %s1673_s13 }
  0x84   : > { %2286 = dma.done.wait (%p68_p1), [#allocation9], 256  }
  0x85   : > { %2288 = vsyncadd (%p68_p1), [#allocation9], 4294967040  ;;  %s3245_s29 = sld [smem:[#allocation27_spill]]  ;;  %s554_s21 = scalar_lea.sflag [#allocation12], %s523_s9 }
  0x8b   : > { %s555_s27 = sand.u32 1, %s3245_s29  }
  0x8c   : > { %s2772_s18 = sshll.u32 %s555_s27, 4 }
  0x8d   : > { %s557_s3 = scalar_lea.vmem [#allocation11], %s2772_s18 }
  0x8e   : > { %2290 = dma.done.wait (%p2605_p11), %s554_s21, 512  }
  0x8f   : > { %2292 = vsyncadd (%p2605_p11), %s554_s21, 4294966784  ;;  %s567_s24 = scalar_lea.vmem [#allocation13], %s2772_s18  ;;  %s574_s10 = scalar_lea.sflag [#allocation15], %s523_s9 }
  0x90   : > { %s577_s14 = scalar_lea.vmem [#allocation14], %s2772_s18 }
  0x91   : > { %2294 = dma.done.wait (%p2605_p11), %s574_s10, 256  }
  0x92   : > { %2296 = vsyncadd (%p2605_p11), %s574_s10, 4294967040  ;;  %s3247_s16 = sld [smem:[#allocation26_spill]] }
  0x98   : > { %s585_s22 = sand.u32 1, %s3247_s16  }
  0x99   : > { %s2786_s12 = sshll.u32 %s585_s22, 3 }
  0x9a   : > { %s587_s13 = scalar_lea.vmem [#allocation16], %s2786_s12 }
  0x9b   : > { %2298 = dma.done.wait (%p2733_p6), %s574_s10, 128  }
  0x9c   : > { %2300 = vsyncadd (%p2733_p6), %s574_s10, 4294967168  ;;  %s1682_s8 = sshll.u32 %s2748_s19, 1  ;;  %s3248_s9 = sld [smem:[#allocation31_spill]] }
  0x9d   : > { %s2794_s28 = scalar_lea.vmem [#allocation17], %s1682_s8 }
  0xa2   : > { %p1683_p1 = scmp.ne.s32.totalorder %s3248_s9, 0 }
  0xa3   : > { %s2368_s5 = smov (!%p1683_p1), 48   ;;  %s2370_s6 = smov (!%p1683_p1), 16  }
  0xa4   : > { %663 = sbr.rel (%p1683_p1) target bundleno = 1451 (0x5ab), region = 96  ;;  %s2372_s29 = smov (!%p1683_p1), 96  }
  0xa5   : > { %s2373_s30 = smov (!%p1683_p1), 32   ;;  %s2374_s27 = smov (!%p1683_p1), 112  }
  0xa6   : > { %s2375_s21 = smov (!%p1683_p1), 1   ;;  %s2376_s10 = smov (!%p1683_p1), 127  }
  0xa9   : > { %v1718_v0 = vld [vmem:[#allocation10] sm:$0xff]  ;;  %v2798_v1 = vld [vmem:[%s2752_s25] sm:$0xff]  ;;  %v2806_v4 = vld [vmem:[%s2759_s0 + $0x10] sm:$0xff]  ;;  %vm708_vm0 = vcmask 130048   ;;  %vm887_vm1 = vcmask 261120   ;;  %vm890_vm2 = vcmask 392192  }
  0xaa   : > { %v2801_v2 = vld [vmem:[%s2752_s25 + $0x8] sm:$0xff]  ;;  %v2809_v5 = vld [vmem:[%s2759_s0 + $0x18] sm:$0xff]  ;;  %746 = vmatpush.bf16.msra.mxu0 %v1718_v0  ;;  %1719 = vmatpush.bf16.msra.mxu1 %v1718_v0  ;;  %v686_v7 = vmul.f32 %v2806_v4, %v2806_v4  ;;  %v2818_v9 = vld [vmem:[%s2752_s25 + $0x10] sm:$0xff]  ;;  %v680_v15 = vmul.f32 %v2798_v1, %v2798_v1  ;;  %vm893_vm3 = vcmask 523264   ;;  %vm896_vm4 = vcmask 654336  }
  0xab   : > { %v692_v3 = vpack.c.bf16 %v2801_v2, %v2798_v1  ;;  %v695_v6 = vpack.c.bf16 %v2809_v5, %v2806_v4  ;;  %v687_v8 = vmul.f32 %v2809_v5, %v2809_v5  ;;  %v2821_v10 = vld [vmem:[%s2752_s25 + $0x18] sm:$0xff]  ;;  %1721 = vmatpush.bf16.msra.mxu3 %v1718_v0  ;;  %1720 = vmatpush.bf16.msra.mxu2 %v1718_v0  ;;  %v2836_v17 = vld [vmem:[%s2759_s0] sm:$0xff]  ;;  %v2839_v18 = vld [vmem:[%s2759_s0 + $0x8] sm:$0xff]  ;;  %s2369_s25 = smov 80   ;;  %s2371_s0 = smov 64   ;;  %vm899_vm5 = vcmask 785408  }
  0xac   : > { %v682_v12 = vmul.f32 %v2818_v9, %v2818_v9  ;;  %v683_v13 = vmul.f32 %v2821_v10, %v2821_v10  ;;  %v681_v16 = vmul.f32 %v2801_v2, %v2801_v2  ;;  %v684_v19 = vmul.f32 %v2836_v17, %v2836_v17 }
  0xad   : > { %v699_v11 = vpack.c.bf16 %v687_v8, %v686_v7  ;;  %1688 = vmatmul.msk.bf16.vlgmr.msra.gmra.mxu0 %vm708_vm0, %v692_v3  ;;  %1691 = vmatmul.msk.bf16.vlgmr.msra.gmra.mxu1 %vm708_vm0, %v695_v6  ;;  %v685_v20 = vmul.f32 %v2839_v18, %v2839_v18  ;;  %v693_v21 = vpack.c.bf16 %v2821_v10, %v2818_v9  ;;  %vm902_vm6 = vcmask 916480  }
  0xae   : > { %v697_v14 = vpack.c.bf16 %v683_v13, %v682_v12  ;;  %v696_v22 = vpack.c.bf16 %v681_v16, %v680_v15  ;;  %v694_v24 = vpack.c.bf16 %v2839_v18, %v2836_v17  ;;  %v688_v25 = vmul.f32 %v2836_v17, %v2798_v1 }
  0xaf   : > { %1695 = vmatmul.msk.bf16.vlgmr.msra.gmra.mxu3 %vm708_vm0, %v699_v11  ;;  %v698_v23 = vpack.c.bf16 %v685_v20, %v684_v19  ;;  %v689_v26 = vmul.f32 %v2839_v18, %v2801_v2  ;;  %v690_v30 = vmul.f32 %v2806_v4, %v2818_v9  ;;  %v691_v31 = vmul.f32 %v2809_v5, %v2821_v10 }
  0xb0   : > { %1693 = vmatmul.msk.bf16.vlgmr.msra.gmra.mxu2 %vm708_vm0, %v697_v14  ;;  %vm1073_vm7 = vcmask 7168   ;;  %vm1094_vm8 = vcmask 121856   ;;  %vm1050_vm9 = vcmask 1040384   ;;  %vm1123_vm10 = vcmask 1046528  }
  0xb1   : > { %v700_v27 = vpack.c.bf16 %v689_v26, %v688_v25  ;;  %v701_v32 = vpack.c.bf16 %v691_v31, %v690_v30  ;;  %vm1273_vm11 = vcmask 130112   ;;  %vm1278_vm12 = vcmask 1041409  }
  0xb2   : > { %vm1281_vm13 = vcmask 123904  }
  0xbd   : > { %1689 = vmatmul.msk.bf16.gmra.mxu0 %vm708_vm0, %v693_v21  ;;  %1692 = vmatmul.msk.bf16.gmra.mxu1 %vm708_vm0, %v696_v22 }
  0xbf   : > { %1696 = vmatmul.msk.bf16.gmra.mxu3 %vm708_vm0, %v700_v27 }
  0xc0   : > { %1694 = vmatmul.msk.bf16.gmra.mxu2 %vm708_vm0, %v698_v23 }
  0xcd   : > { %1690 = vmatmul.msk.bf16.gmra.mxu0 %vm708_vm0, %v694_v24 }
  0xcf   : > { %1697 = vmatmul.msk.bf16.gmra.mxu3 %vm708_vm0, %v701_v32 }
 0x12a   : > { %v748_v28 = vpop.f32.mrf.mxu0  ;;  %v763_v29 = vpop.f32.mrf.mxu1 }
 0x12b   : > { %v804_v33 = vpack.c.bf16 %v763_v29, %v763_v29  ;;  %v798_v34 = vpack.c.bf16 %v748_v28, %v748_v28 }
 0x12d   : > { %v839_v38 = vunpack.c.l.b16 %v804_v33  ;;  %v2863_v41 = vunpack.c.l.b16 %v798_v34 }
 0x132   : > { %v750_v35 = vpop.f32.mrf.mxu0  ;;  %v765_v36 = vpop.f32.mrf.mxu1 }
 0x133   : > { %v799_v37 = vpack.c.bf16 %v750_v35, %v750_v35  ;;  %v805_v39 = vpack.c.bf16 %v765_v36, %v765_v36  ;;  %v773_v40 = vpop.f32.mrf.mxu2  ;;  %v783_v11 = vpop.f32.mrf.mxu3 }
 0x134   : > { %v808_v46 = vpack.c.bf16 %v773_v40, %v773_v40  ;;  %v812_v25 = vpack.c.bf16 %v783_v11, %v783_v11 }
 0x135   : > { %v2865_v42 = vunpack.c.l.b16 %v799_v37  ;;  %v840_v43 = vunpack.c.l.b16 %v805_v39 }
 0x136   : > { %v853_v50 = vunpack.c.l.b16 %v808_v46  ;;  %v867_v28 = vunpack.c.l.b16 %v812_v25 }
 0x137   : > { %v822_v44 = vpack.c.b16 %v2865_v42, %v2863_v41  ;;  %v841_v45 = vpack.c.b16 %v840_v43, %v839_v38 }
 0x139   : > { %842 = vrot.lane.b32.xlu1 %v841_v45, %s2368_s5 }
 0x13a   : > { %v753_v47 = vpop.f32.mrf.mxu0  ;;  %v768_v48 = vpop.f32.mrf.mxu1 }
 0x13b   : > { %v775_v49 = vpop.f32.mrf.mxu2  ;;  %v806_v53 = vpack.c.bf16 %v768_v48, %v768_v48  ;;  %v800_v55 = vpack.c.bf16 %v753_v47, %v753_v47  ;;  %v785_v22 = vpop.f32.mrf.mxu3 }
 0x13c   : > { %v809_v51 = vpack.c.bf16 %v775_v49, %v775_v49  ;;  %v813_v27 = vpack.c.bf16 %v785_v22, %v785_v22  ;;  %v673_v22 = vld [vmem:[%s2765_s23 + $0x8] sm:$0xff] }
 0x13d   : > { %v846_v59 = vunpack.c.l.b16 %v806_v53  ;;  %v825_v62 = vunpack.c.l.b16 %v800_v55 }
 0x13e   : > { %v854_v52 = vunpack.c.l.b16 %v809_v51  ;;  %v868_v29 = vunpack.c.l.b16 %v813_v27 }
 0x140   : > { %v855_v54 = vpack.c.b16 %v854_v52, %v853_v50  ;;  %v869_v30 = vpack.c.b16 %v868_v29, %v867_v28 }
 0x142   : > { %v755_v56 = vpop.f32.mrf.mxu0  ;;  %v770_v57 = vpop.f32.mrf.mxu1  ;;  %856 = vrot.lane.b32.xlu2 %v855_v54, %s2369_s25 }
 0x143   : > { %v801_v58 = vpack.c.bf16 %v755_v56, %v755_v56  ;;  %v807_v60 = vpack.c.bf16 %v770_v57, %v770_v57  ;;  %v778_v61 = vpop.f32.mrf.mxu2  ;;  %v788_v31 = vpop.f32.mrf.mxu3 }
 0x144   : > { %v810_v7 = vpack.c.bf16 %v778_v61, %v778_v61  ;;  %v814_v32 = vpack.c.bf16 %v788_v31, %v788_v31 }
 0x145   : > { %v826_v63 = vunpack.c.l.b16 %v801_v58  ;;  %v847_v0 = vunpack.c.l.b16 %v807_v60 }
 0x146   : > { %v860_v13 = vunpack.c.l.b16 %v810_v7  ;;  %v874_v34 = vunpack.c.l.b16 %v814_v32 }
 0x147   : > { %v827_v3 = vpack.c.b16 %v826_v63, %v825_v62  ;;  %v848_v6 = vpack.c.b16 %v847_v0, %v846_v59  ;;  %v1717_v62 = vld [vmem:[#allocation8] sm:$0xff] }
 0x149   : > { %828 = vrot.lane.b32.xlu0 %v827_v3, %s2370_s6  ;;  %849 = vrot.lane.b32.xlu1 %v848_v6, %s2371_s0 }
 0x14a   : > { %v758_v8 = vpop.f32.mrf.mxu0 }
 0x14b   : > { %v780_v12 = vpop.f32.mrf.mxu2  ;;  %v802_v19 = vpack.c.bf16 %v758_v8, %v758_v8  ;;  %v790_v33 = vpop.f32.mrf.mxu3 }
 0x14c   : > { %v811_v14 = vpack.c.bf16 %v780_v12, %v780_v12  ;;  %v815_v35 = vpack.c.bf16 %v790_v33, %v790_v33 }
 0x14d   : > { %v832_v23 = vunpack.c.l.b16 %v802_v19 }
 0x14e   : > { %v861_v15 = vunpack.c.l.b16 %v811_v14  ;;  %v875_v36 = vunpack.c.l.b16 %v815_v35 }
 0x150   : > { %v862_v16 = vpack.c.b16 %v861_v15, %v860_v13  ;;  %v876_v37 = vpack.c.b16 %v875_v36, %v874_v34  ;;  %v2891_v15 = vld [vmem:[%s2765_s23] sm:$0xff] }
 0x152   : > { %v760_v20 = vpop.f32.mrf.mxu0  ;;  %863 = vrot.lane.b32.xlu2 %v862_v16, %s2372_s29 }
 0x153   : > { %v803_v21 = vpack.c.bf16 %v760_v20, %v760_v20  ;;  %v793_v38 = vpop.f32.mrf.mxu3  ;;  %v2895_v20 = vsub.f32 %v2891_v15, %v2798_v1  ;;  %v674_v1 = vld [vmem:[%s2765_s23 + $0x10] sm:$0xff] }
 0x154   : > { %v816_v39 = vpack.c.bf16 %v793_v38, %v793_v38  ;;  %v2913_v25 = vsub.f32 %v674_v1, %v2818_v9 }
 0x155   : > { %v833_v24 = vunpack.c.l.b16 %v803_v21 }
 0x156   : > { %v879_v43 = vunpack.c.l.b16 %v816_v39 }
 0x157   : > { %v834_v26 = vpack.c.b16 %v833_v24, %v832_v23  ;;  %v2902_v23 = vsub.f32 %v673_v22, %v2801_v2  ;;  %v2910_v24 = vsub.f32 %v674_v1, %v2806_v4  ;;  %v675_v2 = vld [vmem:[%s2765_s23 + $0x18] sm:$0xff] }
 0x159   : > { %835 = vrot.lane.b32.xlu0 %v834_v26, %s2373_s30  ;;  %v2921_v26 = vsub.f32 %v675_v2, %v2821_v10 }
 0x15b   : > { %v795_v40 = vpop.f32.mrf.mxu3 }
 0x15c   : > { %v817_v45 = vpack.c.bf16 %v795_v40, %v795_v40 }
 0x15e   : > { %v880_v46 = vunpack.c.l.b16 %v817_v45 }
 0x160   : > { %v881_v47 = vpack.c.b16 %v880_v46, %v879_v43 }
 0x161   : > { %870 = vrot.lane.b32.xlu0 %v869_v30, %s2374_s27 }
 0x162   : > { %882 = vrot.lane.b32.xlu1 %v881_v47, %s2370_s6 }
 0x19c   : > { %v857_v50 = vpop.permute.xlu2 %856 }
 0x1ab   : > { %v843_v49 = vpop.permute.xlu1 %842 }
 0x1ac   : > { %v864_v58 = vpop.permute.xlu2 %863 }
 0x1bb   : > { %v829_v48 = vpop.permute.xlu0 %828  ;;  %v850_v54 = vpop.permute.xlu1 %849 }
 0x1bc   : > { %v886_v51 = vsel %vm708_vm0, %v822_v44, %v829_v48 }
 0x1cb   : > { %v836_v52 = vpop.permute.xlu0 %835 }
 0x1cc   : > { %v889_v53 = vsel %vm887_vm1, %v886_v51, %v836_v52 }
 0x1cd   : > { %v892_v55 = vsel %vm890_vm2, %v889_v53, %v843_v49 }
 0x1ce   : > { %v895_v56 = vsel %vm893_vm3, %v892_v55, %v850_v54 }
 0x1cf   : > { %v898_v57 = vsel %vm896_vm4, %v895_v56, %v857_v50 }
 0x1d0   : > { %v901_v60 = vsel %vm899_vm5, %v898_v57, %v864_v58 }
 0x1d3   : > { %v871_v59 = vpop.permute.xlu0 %870 }
 0x1d4   : > { %v904_v61 = vsel %vm902_vm6, %v901_v60, %v871_v59  ;;  %v883_v41 = vpop.permute.xlu1 %882 }
 0x1d5   : > { %925 = vmatpush.bf16.msrb.mxu1 %v904_v61  ;;  %v908_v42 = vsel %vm708_vm0, %v876_v37, %v883_v41  ;;  %v2942_v41 = vsub.f32 %v675_v2, %v2809_v5 }
 0x1d6   : > { %939 = vmatpush.bf16.msrb.mxu2 %v908_v42  ;;  %v2945_v42 = vsub.f32 %v673_v22, %v2839_v18 }
 0x1d8   : > { %1702 = vmatmul.msk.bf16.vlgmr.msrb.gmra.mxu1 %vm708_vm0, %v1717_v62 }
 0x1d9   : > { %1703 = vmatmul.msk.bf16.vlgmr.msrb.gmra.mxu2 %vm708_vm0, %v1717_v62  ;;  %v2935_v62 = vsub.f32 %v2891_v15, %v2836_v17 }
 0x255   : > { %v927_v44 = vpop.f32.mrf.mxu1 }
 0x256   : > { %v946_v63 = vmul.f32 %v927_v44, %v927_v44 }
 0x258   : > { %960 = vrot.lane.b32.xlu2 %v946_v63, %s2371_s0 }
 0x25c   : > { %v941_v28 = vpop.f32.mrf.mxu2 }
 0x25d   : > { %v929_v0 = vpop.f32.mrf.mxu1 }
 0x25e   : > { %v947_v3 = vmul.f32 %v929_v0, %v929_v0 }
 0x260   : > { %962 = vrot.lane.b32.xlu0 %v947_v3, %s2371_s0 }
 0x264   : > { %v943_v31 = vpop.f32.mrf.mxu2 }
 0x268   : > { %980 = vrot.lane.b32.xlu0 %v946_v63, %s2372_s29 }
 0x270   : > { %952 = vrot.lane.b32.xlu0 %v929_v0, %s2372_s29 }
 0x2b2   : > { %v961_v6 = vpop.permute.xlu2 %960 }
 0x2b3   : > { %v966_v7 = vsub.f32 %v927_v44, %v961_v6 }
 0x2b5   : > { %992 = vrot.lane.b32.xlu1 %v966_v7, %s2372_s29 }
 0x2bd   : > { %982 = vrot.lane.b32.xlu1 %v947_v3, %s2372_s29 }
 0x2d2   : > { %v963_v8 = vpop.permute.xlu0 %962 }
 0x2d3   : > { %v967_v11 = vsub.f32 %v929_v0, %v963_v8 }
 0x2d5   : > { %994 = vrot.lane.b32.xlu2 %v967_v11, %s2372_s29 }
 0x2da   : > { %v981_v27 = vpop.permute.xlu0 %980 }
 0x2db   : > { %v986_v47 = vadd.f32 %v981_v27, %v946_v63 }
 0x2dd   : > { %950 = vrot.lane.b32.xlu2 %v927_v44, %s2372_s29  ;;  %v988_v49 = vadd.f32 0.0001, %v986_v47 }
 0x2e2   : > { %v953_v4 = vpop.permute.xlu0 %952 }
 0x2e3   : > { %v957_v29 = vmul.f32 %v953_v4, %v929_v0 }
 0x2e5   : > { %v969_v33 = vsub.f32 %v943_v31, %v957_v29  ;;  %v971_v38 = vmul.f32 2.0, %v957_v29 }
 0x2e7   : > { %v975_v35 = vmul.f32 2.0, %v969_v33  ;;  %v973_v39 = vadd.f32 0.0001, %v971_v38 }
 0x2e9   : > { %v977_v10 = vadd.f32 0.0009, %v975_v35 }
 0x2eb   : > { %v979_v40 = vmul.f32 %v977_v10, %v973_v39 }
 0x327   : > { %v993_v12 = vpop.permute.xlu1 %992 }
 0x328   : > { %v998_v13 = vadd.f32 %v993_v12, %v966_v7 }
 0x32a   : > { %v1000_v14 = vadd.f32 0.0009, %v998_v13 }
 0x32c   : > { %1004 = vrot.lane.b32.xlu1 %v1000_v14, %s2371_s0 }
 0x32f   : > { %v995_v16 = vpop.permute.xlu2 %994  ;;  %v983_v30 = vpop.permute.xlu1 %982 }
 0x330   : > { %v999_v19 = vadd.f32 %v995_v16, %v967_v11  ;;  %v987_v32 = vadd.f32 %v983_v30, %v947_v3 }
 0x332   : > { %v1001_v21 = vadd.f32 0.0009, %v999_v19  ;;  %v989_v34 = vadd.f32 0.0001, %v987_v32 }
 0x334   : > { %1006 = vrot.lane.b32.xlu2 %v1001_v21, %s2371_s0  ;;  %1061 = vrot.lane.b32.xlu1 %v2895_v20, %s2375_s21 }
 0x337   : > { %v951_v9 = vpop.permute.xlu2 %950 }
 0x338   : > { %v956_v43 = vmul.f32 %v951_v9, %v927_v44  ;;  %v1144_v9 = vmul.f32 1.125, %v2895_v20 }
 0x33a   : > { %v968_v48 = vsub.f32 %v941_v28, %v956_v43  ;;  %v970_v53 = vmul.f32 2.0, %v956_v43 }
 0x33c   : > { %1084 = vrot.lane.b32.xlu2 %v2902_v23, %s2376_s10  ;;  %1063 = vrot.lane.b32.xlu1 %v2902_v23, %s2375_s21  ;;  %v974_v50 = vmul.f32 2.0, %v968_v48  ;;  %v972_v55 = vadd.f32 0.0001, %v970_v53 }
 0x33e   : > { %v976_v54 = vadd.f32 0.0009, %v974_v50 }
 0x340   : > { %v978_v56 = vmul.f32 %v976_v54, %v972_v55 }
 0x344   : > { %1164 = vrot.lane.b32.xlu2 %v2910_v24, %s2375_s21  ;;  %1065 = vrot.lane.b32.xlu1 %v2913_v25, %s2375_s21 }
 0x34c   : > { %1067 = vrot.lane.b32.xlu1 %v2921_v26, %s2375_s21 }
 0x38e   : > { %v1007_v36 = vpop.permute.xlu2 %1006 }
 0x38f   : > { %v1011_v37 = vmul.f32 %v1007_v36, %v989_v34 }
 0x391   : > { %1919 = vrcp.f32 %v1011_v37 }
 0x396   : > { %v1085_v0 = vpop.permute.xlu2 %1084 }
 0x397   : > { %v1920_v45 = vpop.eup %1919  ;;  %v1096_v8 = vsel %vm1094_vm8, %v1085_v0, 0.0 }
 0x398   : > { %v1015_v46 = vmul.f32 %v1920_v45, %v979_v40 }
 0x39a   : > { %1033 = vrot.lane.b32.xlu1 %v1015_v46, %s2374_s27  ;;  %v1017_v60 = vsel %vm708_vm0, %v1015_v46, 0.0 }
 0x39e   : > { %v1005_v51 = vpop.permute.xlu1 %1004  ;;  %v2965_v15 = vpop.permute.xlu2 %1164 }
 0x39f   : > { %v1010_v52 = vmul.f32 %v1005_v51, %v988_v49 }
 0x3a1   : > { %1921 = vrcp.f32 %v1010_v52 }
 0x3a2   : > { %1082 = vrot.lane.b32.xlu1 %v2895_v20, %s2376_s10 }
 0x3a6   : > { %v1062_v5 = vpop.permute.xlu1 %1061 }
 0x3a7   : > { %v1922_v57 = vpop.eup %1921  ;;  %v1074_v6 = vsel %vm1073_vm7, 0.0, %v1062_v5 }
 0x3a8   : > { %v1014_v58 = vmul.f32 %v1922_v57, %v978_v56  ;;  %v1078_v11 = vadd.f32 %v1074_v6, %v2895_v20 }
 0x3aa   : > { %1031 = vrot.lane.b32.xlu0 %v1014_v58, %s2374_s27  ;;  %v1016_v59 = vsel %vm708_vm0, %v1014_v58, 0.0  ;;  %1086 = vrot.lane.b32.xlu1 %v2913_v25, %s2376_s10 }
 0x3ab   : > { %v1018_v61 = vadd.f32 %v1017_v60, %v1016_v59 }
 0x3ad   : > { %1019 = vadd.xlane.f32.xlu2 %v1018_v61 }
 0x3ae   : > { %v1064_v17 = vpop.permute.xlu1 %1063 }
 0x3af   : > { %v1075_v3 = vsel %vm1073_vm7, 0.0, %v1064_v17  ;;  %v1146_v17 = vmul.f32 1.125, %v2913_v25 }
 0x3b0   : > { %v1079_v7 = vadd.f32 %v1075_v3, %v2902_v23  ;;  %v1147_v3 = vmul.f32 1.125, %v2921_v26 }
 0x3b2   : > { %1088 = vrot.lane.b32.xlu0 %v2921_v26, %s2376_s10  ;;  %1160 = vrot.lane.b32.xlu1 %v2935_v62, %s2375_s21  ;;  %v2963_v14 = vadd.f32 %v1096_v8, %v1079_v7 }
 0x3b4   : > { %v1125_v1 = vrot.slane %v2963_v14, 1 }
 0x3b6   : > { %v1066_v44 = vpop.permute.xlu1 %1065 }
 0x3b7   : > { %v1076_v22 = vsel %vm1073_vm7, 0.0, %v1066_v44 }
 0x3b8   : > { %v1080_v28 = vadd.f32 %v1076_v22, %v2913_v25 }
 0x3ba   : > { %1166 = vrot.lane.b32.xlu0 %v2942_v41, %s2375_s21  ;;  %1162 = vrot.lane.b32.xlu1 %v2945_v42, %s2375_s21 }
 0x3be   : > { %v1068_v18 = vpop.permute.xlu1 %1067 }
 0x3bf   : > { %v1077_v10 = vsel %vm1073_vm7, 0.0, %v1068_v18 }
 0x3c0   : > { %v1081_v20 = vadd.f32 %v1077_v10, %v2921_v26 }
 0x3c2   : > { %1180 = vrot.lane.b32.xlu1 %v2935_v62, %s2376_s10 }
 0x3c5   : > { %1182 = vrot.lane.b32.xlu2 %v2945_v42, %s2376_s10 }
 0x3ca   : > { %1186 = vrot.lane.b32.xlu1 %v2942_v41, %s2376_s10 }
 0x40c   : > { %v1034_v63 = vpop.permute.xlu1 %1033 }
 0x40d   : > { %v1038_v31 = vsel %vm708_vm0, %v1034_v63, 0.0 }
 0x414   : > { %v1083_v12 = vpop.permute.xlu1 %1082 }
 0x415   : > { %v1095_v13 = vsel %vm1094_vm8, %v1083_v12, 0.0 }
 0x416   : > { %v2967_v16 = vadd.f32 %v1095_v13, %v1078_v11 }
 0x418   : > { %v1107_v19 = vrot.slane %v2967_v16, 7  ;;  %v1124_v21 = vrot.slane %v2967_v16, 1 }
 0x41a   : > { %v1117_v2 = vsel %vm1050_vm9, 0.0, %v1107_v19  ;;  %v1126_v30 = vsel %vm1123_vm10, %v1124_v21, %v1125_v1  ;;  %v1108_v21 = vrot.slane %v2963_v14, 7 }
 0x41b   : > { %v1119_v27 = vadd.f32 %v1117_v2, %v2967_v16  ;;  %v1134_v2 = vsel %vm1123_vm10, %v1125_v1, 0.0 }
 0x41c   : > { %v1032_v4 = vpop.permute.xlu0 %1031  ;;  %v1087_v29 = vpop.permute.xlu1 %1086  ;;  %v1109_v26 = vsel %vm1050_vm9, %v1107_v19, %v1108_v21 }
 0x41d   : > { %v1037_v32 = vsel %vm708_vm0, %v1032_v4, 0.0  ;;  %v1097_v33 = vsel %vm1094_vm8, %v1087_v29, 0.0  ;;  %v1136_v34 = vadd.f32 %v1126_v30, %v1119_v27  ;;  %v1120_v22 = vadd.f32 %v1109_v26, %v2963_v14 }
 0x41e   : > { %v1039_v35 = vadd.f32 %v1038_v31, %v1037_v32  ;;  %v1101_v36 = vadd.f32 %v1097_v33, %v1080_v28  ;;  %v1145_v29 = vmul.f32 1.125, %v2902_v23 }
 0x41f   : > { %v1140_v37 = vmul.f32 0.125, %v1136_v34  ;;  %v1137_v27 = vadd.f32 %v1134_v2, %v1120_v22 }
 0x420   : > { %v1020_v38 = vpop.xlane.xlu2 %1019  ;;  %1040 = vadd.xlane.f32.xlu0 %v1039_v35  ;;  %v1110_v43 = vrot.slane %v1101_v36, 7  ;;  %v1127_v56 = vrot.slane %v1101_v36, 1 }
 0x421   : > { %v1021_v39 = vrot.slane %v1020_v38, 4  ;;  %v1148_v40 = vsub.f32 %v1140_v37, %v1144_v9  ;;  %v1141_v4 = vmul.f32 0.125, %v1137_v27 }
 0x422   : > { %v1118_v52 = vsel %vm1050_vm9, 0.0, %v1110_v43 }
 0x423   : > { %v1022_v45 = vadd.f32 %v1021_v39, %v1020_v38  ;;  %v1248_v46 = vmul.f32 %v1148_v40, %v1148_v40  ;;  %v1121_v57 = vadd.f32 %v1118_v52, %v1101_v36  ;;  %v1149_v30 = vsub.f32 %v1141_v4, %v1145_v29 }
 0x424   : > { %v1089_v47 = vpop.permute.xlu0 %1088  ;;  %v1161_v28 = vpop.permute.xlu1 %1160  ;;  %v1240_v52 = vmul.f32 1.125, %v2935_v62 }
 0x425   : > { %v1023_v48 = vrot.slane %v1022_v45, 2  ;;  %v1098_v49 = vsel %vm1094_vm8, %v1089_v47, 0.0  ;;  %v1252_v50 = vsel %vm708_vm0, %v1248_v46, 0.0  ;;  %v1249_v9 = vmul.f32 %v1149_v30, %v1149_v30 }
 0x426   : > { %v1102_v51 = vadd.f32 %v1098_v49, %v1081_v20  ;;  %1253 = vadd.xlane.f32.xlu2 %v1252_v50  ;;  %v1172_v33 = vsel %vm1073_vm7, 0.0, %v1161_v28 }
 0x427   : > { %v1024_v53 = vadd.f32 %v1023_v48, %v1022_v45  ;;  %v1255_v32 = vsel %vm708_vm0, %v1249_v9, 0.0  ;;  %v1176_v16 = vadd.f32 %v1172_v33, %v2935_v62 }
 0x428   : > { %v1111_v54 = vrot.slane %v1102_v51, 7  ;;  %v1128_v55 = vrot.slane %v1102_v51, 1  ;;  %v1183_v23 = vpop.permute.xlu2 %1182 }
 0x429   : > { %v1025_v58 = vrot.slane %v1024_v53, 1  ;;  %v1193_v37 = vsel %vm1094_vm8, %v1183_v23, 0.0  ;;  %v2377_v23 = vmov 0  }
 0x42a   : > { %v1129_v59 = vsel %vm1123_vm10, %v1127_v56, %v1128_v55  ;;  %v1112_v60 = vsel %vm1050_vm9, %v1110_v43, %v1111_v54  ;;  %v1135_v18 = vsel %vm1123_vm10, %v1128_v55, 0.0  ;;  %v1241_v54 = vmul.f32 1.125, %v2945_v42  ;;  %1918 = vset.pattern.permute.xlu0 %v2377_v23 }
 0x42b   : > { %v1026_v61 = vadd.f32 %v1025_v58, %v1024_v53  ;;  %v1138_v5 = vadd.f32 %v1129_v59, %v1121_v57  ;;  %v1122_v44 = vadd.f32 %v1112_v60, %v1102_v51 }
 0x42c   : > { %v1163_v31 = vpop.permute.xlu1 %1162 }
 0x42d   : > { %1722 = vpush %v1026_v61  ;;  %v1142_v63 = vmul.f32 0.125, %v1138_v5  ;;  %v1139_v0 = vadd.f32 %v1135_v18, %v1122_v44  ;;  %v1173_v1 = vsel %vm1073_vm7, 0.0, %v1163_v31  ;;  %v1167_v61 = vpop.permute.xlu0 %1166 }
 0x42e   : > { %v1177_v35 = vadd.f32 %v1173_v1, %v2945_v42  ;;  %v1175_v42 = vsel %vm1073_vm7, 0.0, %v1167_v61 }
 0x42f   : > { %v1150_v6 = vsub.f32 %v1142_v63, %v1146_v17  ;;  %v1143_v7 = vmul.f32 0.125, %v1139_v0 }
 0x430   : > { %v1197_v10 = vadd.f32 %v1193_v37, %v1177_v35 }
 0x431   : > { %v1250_v8 = vmul.f32 %v1150_v6, %v1150_v6  ;;  %v1151_v11 = vsub.f32 %v1143_v7, %v1147_v3  ;;  %v1179_v6 = vadd.f32 %v1175_v42, %v2942_v41  ;;  %v1174_v7 = vsel %vm1073_vm7, 0.0, %v2965_v15 }
 0x432   : > { %v1205_v40 = vrot.slane %v1197_v10, 7  ;;  %v1221_v46 = vrot.slane %v1197_v10, 1 }
 0x433   : > { %v1258_v12 = vsel %vm708_vm0, %v1250_v8, 0.0  ;;  %v1251_v13 = vmul.f32 %v1151_v11, %v1151_v11  ;;  %v1178_v11 = vadd.f32 %v1174_v7, %v2910_v24 }
 0x434   : > { %1184 = vrot.lane.b32.xlu0 %v2910_v24, %s2376_s10  ;;  %1259 = vadd.xlane.f32.xlu1 %v1258_v12  ;;  %v1181_v19 = vpop.permute.xlu1 %1180  ;;  %v1230_v48 = vsel %vm1123_vm10, %v1221_v46, 0.0 }
 0x435   : > { %v1261_v25 = vsel %vm708_vm0, %v1251_v13, 0.0  ;;  %v1192_v14 = vsel %vm1094_vm8, %v1181_v19, 0.0 }
 0x436   : > { %1262 = vadd.xlane.f32.xlu2 %v1261_v25  ;;  %v1196_v34 = vadd.f32 %v1192_v14, %v1176_v16  ;;  %v1243_v16 = vmul.f32 1.125, %v2942_v41 }
 0x438   : > { %v1204_v36 = vrot.slane %v1196_v34, 7  ;;  %v1220_v39 = vrot.slane %v1196_v34, 1 }
 0x43a   : > { %v1214_v38 = vsel %vm1050_vm9, 0.0, %v1204_v36  ;;  %v1206_v45 = vsel %vm1050_vm9, %v1204_v36, %v1205_v40  ;;  %v1222_v47 = vsel %vm1123_vm10, %v1220_v39, %v1221_v46  ;;  %v1268_v39 = vlaneseq }
 0x43b   : > { %v1216_v43 = vadd.f32 %v1214_v38, %v1196_v34  ;;  %v1217_v20 = vadd.f32 %v1206_v45, %v1197_v10 }
 0x43c   : > { %v1187_v3 = vpop.permute.xlu1 %1186 }
 0x43d   : > { %v1232_v49 = vadd.f32 %v1222_v47, %v1216_v43  ;;  %v1233_v50 = vadd.f32 %v1230_v48, %v1217_v20  ;;  %v1195_v8 = vsel %vm1094_vm8, %v1187_v3, 0.0 }
 0x43e   : > { %v1199_v12 = vadd.f32 %v1195_v8, %v1179_v6 }
 0x43f   : > { %v1236_v51 = vmul.f32 0.125, %v1232_v49  ;;  %v1237_v53 = vmul.f32 0.125, %v1233_v50 }
 0x440   : > { %v1208_v26 = vrot.slane %v1199_v12, 7  ;;  %v1224_v22 = vrot.slane %v1199_v12, 1 }
 0x441   : > { %v1244_v55 = vsub.f32 %v1236_v51, %v1240_v52  ;;  %v1245_v56 = vsub.f32 %v1237_v53, %v1241_v54 }
 0x442   : > { %v1231_v9 = vsel %vm1123_vm10, %v1224_v22, 0.0 }
 0x443   : > { %v1286_v57 = vmul.f32 %v1244_v55, %v1244_v55  ;;  %v1287_v58 = vmul.f32 %v1245_v56, %v1245_v56 }
 0x445   : > { %v1290_v59 = vsel %vm708_vm0, %v1286_v57, 0.0  ;;  %v1293_v60 = vsel %vm708_vm0, %v1287_v58, 0.0 }
 0x446   : > { %1294 = vadd.xlane.f32.xlu1 %v1293_v60 }
 0x45e   : > { %1256 = vadd.xlane.f32.xlu0 %v1255_v32  ;;  %v1242_v32 = vmul.f32 1.125, %v2910_v24  ;;  %v1269_v24 = vand.u32 127, %v1268_v39  ;;  %s1723_s23 = spop %1722 }
 0x45f   : > { %v1028_v46 = vstv %s1723_s23 }
 0x460   : > { %v1271_v40 = vadd.s32 4294967288, %v1269_v24  ;;  %vm1325_vm14 = vcmp.eq.s32.totalorder %v1269_v24, 1  ;;  %vm1318_vm15 = vcmp.eq.s32.totalorder %v1269_v24, 0 }
 0x466   : > { %1291 = vadd.xlane.f32.xlu0 %v1290_v59 }
 0x493   : > { %v1041_v5 = vpop.xlane.xlu0 %1040 }
 0x494   : > { %v1042_v17 = vrot.slane %v1041_v5, 4 }
 0x496   : > { %v1043_v44 = vadd.f32 %v1042_v17, %v1041_v5 }
 0x498   : > { %v1044_v18 = vrot.slane %v1043_v44, 2 }
 0x499   : > { %v1254_v10 = vpop.xlane.xlu2 %1253 }
 0x49a   : > { %v1045_v63 = vadd.f32 %v1044_v18, %v1043_v44  ;;  %v1270_v20 = vperm.slane %v1254_v10, %v1269_v24 }
 0x49c   : > { %v1046_v62 = vrot.slane %v1045_v63, 1 }
 0x49e   : > { %v1047_v0 = vadd.f32 %v1046_v62, %v1045_v63 }
 0x4a0   : > { %1724 = vpush %v1047_v0 }
 0x4a6   : > { %v1185_v13 = vpop.permute.xlu0 %1184 }
 0x4a7   : > { %v1194_v25 = vsel %vm1094_vm8, %v1185_v13, 0.0  ;;  %v1260_v41 = vpop.xlane.xlu1 %1259 }
 0x4a8   : > { %v1198_v21 = vadd.f32 %v1194_v25, %v1178_v11  ;;  %v1275_v48 = vperm.slane %v1260_v41, %v1269_v24 }
 0x4a9   : > { %v1263_v43 = vpop.xlane.xlu2 %1262 }
 0x4aa   : > { %v1207_v2 = vrot.slane %v1198_v21, 7  ;;  %v1223_v27 = vrot.slane %v1198_v21, 1  ;;  %v1276_v45 = vperm.slane %v1263_v43, %v1271_v40 }
 0x4ac   : > { %v1215_v28 = vsel %vm1050_vm9, 0.0, %v1207_v2  ;;  %v1209_v4 = vsel %vm1050_vm9, %v1207_v2, %v1208_v26  ;;  %v1225_v15 = vsel %vm1123_vm10, %v1223_v27, %v1224_v22  ;;  %v1277_v54 = vsel %vm1273_vm11, %v1276_v45, %v1275_v48 }
 0x4ad   : > { %v1218_v29 = vadd.f32 %v1215_v28, %v1198_v21  ;;  %v1219_v30 = vadd.f32 %v1209_v4, %v1199_v12 }
 0x4af   : > { %v1234_v31 = vadd.f32 %v1225_v15, %v1218_v29  ;;  %v1235_v33 = vadd.f32 %v1231_v9, %v1219_v30 }
 0x4b1   : > { %v1238_v19 = vmul.f32 0.125, %v1234_v31  ;;  %v1239_v14 = vmul.f32 0.125, %v1235_v33 }
 0x4b3   : > { %v1246_v34 = vsub.f32 %v1238_v19, %v1242_v32  ;;  %v1247_v1 = vsub.f32 %v1239_v14, %v1243_v16 }
 0x4b5   : > { %v1288_v35 = vmul.f32 %v1246_v34, %v1246_v34  ;;  %v1289_v36 = vmul.f32 %v1247_v1, %v1247_v1 }
 0x4b7   : > { %v1296_v37 = vsel %vm708_vm0, %v1288_v35, 0.0  ;;  %v1299_v38 = vsel %vm708_vm0, %v1289_v36, 0.0  ;;  %vm1328_vm0 = vcmp.eq.s32.totalorder %v1269_v24, 2 }
 0x4b8   : > { %1297 = vadd.xlane.f32.xlu2 %v1296_v37  ;;  %1300 = vadd.xlane.f32.xlu0 %v1299_v38 }
 0x4b9   : > { %v1295_v58 = vpop.xlane.xlu1 %1294 }
 0x4ba   : > { %v1307_v60 = vperm.slane %v1295_v58, %v1271_v40 }
 0x4d1   : > { %s1725_s16 = spop %1724  ;;  %v1257_v47 = vpop.xlane.xlu0 %1256 }
 0x4d2   : > { %v1049_v49 = vstv %s1725_s16  ;;  %v1272_v50 = vperm.slane %v1257_v47, %v1271_v40 }
 0x4d3   : > { %v1051_v51 = vsel %vm1050_vm9, %v1028_v46, %v1049_v49 }
 0x4d4   : > { %v1052_v52 = vmul.f32 0.00390625, %v1051_v51  ;;  %v1274_v53 = vsel %vm1273_vm11, %v1272_v50, %v1270_v20 }
 0x4d5   : > { %v1279_v55 = vsel %vm1278_vm12, %v1277_v54, %v1274_v53 }
 0x4d6   : > { %1321 = vperm.xlu0 %1918, %v1052_v52   ;;  %v1282_v56 = vsel %vm1281_vm13, %v1279_v55, 0.0 }
 0x4d7   : > { %1283 = vadd.xlane.f32.xlu1 %v1282_v56 }
 0x4d9   : > { %v1292_v57 = vpop.xlane.xlu0 %1291 }
 0x4da   : > { %v1306_v59 = vperm.slane %v1292_v57, %v1269_v24 }
 0x4dc   : > { %v1308_v18 = vsel %vm1273_vm11, %v1307_v60, %v1306_v59 }
 0x52b   : > { %v1298_v61 = vpop.xlane.xlu2 %1297  ;;  %v1301_v5 = vpop.xlane.xlu0 %1300 }
 0x52c   : > { %v1309_v17 = vperm.slane %v1298_v61, %v1269_v24  ;;  %v1310_v44 = vperm.slane %v1301_v5, %v1271_v40 }
 0x52e   : > { %v1311_v63 = vsel %vm1273_vm11, %v1310_v44, %v1309_v17 }
 0x52f   : > { %v1312_v62 = vsel %vm1278_vm12, %v1311_v63, %v1308_v18 }
 0x530   : > { %v1314_v0 = vsel %vm1281_vm13, %v1312_v62, 0.0 }
 0x531   : > { %1315 = vadd.xlane.f32.xlu2 %v1314_v0 }
 0x548   : > { %v1322_v6 = vpop.permute.xlu0 %1321 }
 0x549   : > { %v1324_v11 = vsel %vm1318_vm15, %v1322_v6, 0.0 }
 0x54a   : > { %v1284_v42 = vpop.xlane.xlu1 %1283 }
 0x54b   : > { %v1285_v3 = vmul.f32 0.00390625, %v1284_v42 }
 0x54d   : > { %v1326_v7 = vsel %vm1325_vm14, %v1285_v3, 0.0 }
 0x54e   : > { %v1327_v13 = vadd.f32 %v1326_v7, %v1324_v11 }
 0x5a4   : > { %v1316_v8 = vpop.xlane.xlu2 %1315 }
 0x5a5   : > { %v1317_v12 = vmul.f32 0.00390625, %v1316_v8 }
 0x5a7   : > { %v1329_v25 = vsel %vm1328_vm0, %v1317_v12, 0.0 }
 0x5a8   : > { %v1330_v21 = vadd.f32 %v1329_v25, %v1327_v13 }
 0x5aa   : > { %1331 = vst [vmem:[%s2794_s28] sm:$0x3] %v1330_v21 }
 0x5ab PF: > { %v1332_v26 = vld [vmem:[%s557_s3] sm:$0xff]  ;;  %v1333_v4 = vld [vmem:[%s557_s3 + $0x8] sm:$0xff]  ;;  %v1353_v37 = vlaneseq  ;;  %s3249_s18 = sld [smem:[#allocation32_spill]]  ;;  %vm1357_vm1 = vcmask 1041409   ;;  %vm1360_vm2 = vcmask 58368   ;;  %s1402_s9 = sshll.u32 %s2794_s28, 4  ;;  %s1403_s9 = int_to_ptr.vmem [resolvable:$true] %s1402_s9 }
 0x5ac   : > { %v1336_v22 = vld [vmem:[%s577_s14] sm:$0xff]  ;;  %v1337_v29 = vld [vmem:[%s577_s14 + $0x8] sm:$0xff]  ;;  %s3250_s22 = sld [smem:[#allocation51_spill]]  ;;  %s1390_s25 = scalar_lea.sflag [#allocation4], %s2748_s19 }
 0x5ad   : > { %v1338_v2 = vld [vmem:[%s587_s13] sm:$0xff]  ;;  %v1341_v27 = vsub.f32 %v1332_v26, %v1336_v22  ;;  %v1335_v15 = vld [vmem:[%s567_s24 + $0x8] sm:$0xff]  ;;  %v1342_v31 = vsub.f32 %v1333_v4, %v1337_v29  ;;  %v1354_v38 = vand.u32 127, %v1353_v37 }
 0x5ae   : > { %v1334_v28 = vld [vmem:[%s567_s24] sm:$0xff]  ;;  %v1340_v33 = vsub.f32 %v1333_v4, %v1335_v15 }
 0x5af   : > { %v1339_v30 = vsub.f32 %v1332_v26, %v1334_v28  ;;  %v1364_v9 = vmul.f32 %v1341_v27, %v1338_v2  ;;  %v1365_v14 = vmul.f32 %v1342_v31, %v1338_v2  ;;  %vm1381_vm3 = vcmp.eq.s32.totalorder %v1354_v38, 3 }
 0x5b0   : > { %v1344_v34 = vmul.f32 %v1340_v33, %v1338_v2  ;;  %vm1383_vm4 = vcmp.eq.s32.totalorder %v1354_v38, 4 }
 0x5b1   : > { %v1343_v32 = vmul.f32 %v1339_v30, %v1338_v2  ;;  %v1366_v16 = vmul.f32 %v1364_v9, %v1341_v27  ;;  %v1367_v1 = vmul.f32 %v1365_v14, %v1342_v31  ;;  %s1705_s3 = sshll.u32 %s3249_s18, 1  ;;  %v1386_v51 = vld [vmem:[%s2794_s28] sm:$0x3] }
 0x5b2   : > { %v1346_v35 = vmul.f32 %v1344_v34, %v1340_v33  ;;  %s3251_s8 = smov %s3250_s22  ;;  %s1400_s12 = scalar_lea.hbm %s3250_s22, %s1705_s3 }
 0x5b3   : > { %v1345_v19 = vmul.f32 %v1343_v32, %v1339_v30  ;;  %1368 = vadd.xlane.f32.xlu1 %v1366_v16  ;;  %s1404_s5 = sshll.u32 %s1400_s12, 4  ;;  %s2213_s27 = scalar_lea.hbm %s3251_s8, 4  ;;  %s1405_s5 = int_to_ptr.hbm [resolvable:$true] %s1404_s5 }
 0x5b4   : > { %s2207_s6 = sshra.s32 %s1405_s5, 4  ;;  %s2208_s6 = int_to_ptr.hbm [resolvable:$true] %s2207_s6 }
 0x5b5   : > { %1347 = vadd.xlane.f32.xlu0 %v1345_v19  ;;  %s2209_s0 = scalar_lea.hbm %s2208_s6, 2  ;;  %p2214_p5 = scmp.lt.s32.totalorder %s2208_s6, %s3251_s8 }
 0x5b6   : > { %p2210_p3 = scmp.ne.s32.totalorder %s2208_s6, %s2209_s0  ;;  %p2215_p4 = scmp.lt.s32.totalorder %s2213_s27, %s2209_s0 }
 0x5b8   : > { %p2211_p12 = pnand %p2210_p3, %p2541_p13  ;;  %p2216_p10 = por %p2215_p4, %p2214_p5 }
 0x5ba   : > { %p2212_p11 = pneg %p2211_p12 }
 0x5bb   : > { %1370 = vadd.xlane.f32.xlu1 %v1367_v1 }
 0x5bc   : > { %p2217_p8 = pnand %p2216_p10, %p2212_p11 }
 0x5bd   : > { %1349 = vadd.xlane.f32.xlu0 %v1346_v35 }
 0x626   : > { %v1369_v36 = vpop.xlane.xlu1 %1368 }
 0x627   : > { %v1374_v45 = vperm.slane %v1369_v36, %v1354_v38 }
 0x628   : > { %v1348_v23 = vpop.xlane.xlu0 %1347 }
 0x629   : > { %v1355_v39 = vperm.slane %v1348_v23, %v1354_v38 }
 0x62e   : > { %v1371_v40 = vpop.xlane.xlu1 %1370 }
 0x62f   : > { %v1375_v46 = vperm.slane %v1371_v40, %v1354_v38 }
 0x630   : > { %v1350_v10 = vpop.xlane.xlu0 %1349 }
 0x631   : > { %v1356_v24 = vperm.slane %v1350_v10, %v1354_v38  ;;  %v1376_v20 = vsel %vm1357_vm1, %v1375_v46, %v1374_v45 }
 0x632   : > { %v1378_v47 = vsel %vm1360_vm2, %v1376_v20, 0.0 }
 0x633   : > { %v1358_v43 = vsel %vm1357_vm1, %v1356_v24, %v1355_v39 }
 0x634   : > { %v1361_v41 = vsel %vm1360_vm2, %v1358_v43, 0.0 }
 0x635   : > { %1362 = vadd.xlane.f32.xlu2 %v1361_v41 }
 0x63d   : > { %1379 = vadd.xlane.f32.xlu2 %v1378_v47 }
 0x6a8   : > { %v1363_v48 = vpop.xlane.xlu2 %1362 }
 0x6a9   : > { %v1382_v50 = vsel %vm1381_vm3, %v1363_v48, 0.0 }
 0x6b0   : > { %v1380_v49 = vpop.xlane.xlu2 %1379 }
 0x6b1   : > { %v1384_v52 = vsel %vm1383_vm4, %v1380_v49, 0.0 }
 0x6b2   : > { %v1385_v53 = vadd.f32 %v1384_v52, %v1382_v50 }
 0x6b4   : > { %v1387_v54 = vadd.f32 %v1386_v51, %v1385_v53 }
 0x6b6   : > { %1388 = vst [vmem:[%s2794_s28] sm:$0x3] %v1387_v54 }
 0x6b7   : > { %2220 = shalt.err (!%p2217_p8)
}
 0x6b8   : > { %1748 = dma.vmem_to_hbm [thread:$0]  (%p2541_p13), %s1403_s9, 32, %s1405_s5, %s1390_s25  }
 0x6b9 PF: > { %s3253_s19 = sld [smem:[#allocation34_spill]] }
 0x6ba   : > { %s3254_s28 = sld [smem:[#allocation29_spill]] }
 0x6bf   : > { %p1788_p2 = scmp.ge.s32.totalorder %s3253_s19, 2 }
 0x6c0   : > { %s1416_s16 = sand.u32 1, %s3254_s28  }
 0x6c1   : > { %p1780_p6 = pnand %p1788_p2, %p2545_p0  ;;  %s1417_s18 = scalar_lea.sflag [#allocation4], %s1416_s16 }
 0x6c3   : > { %p1781_p7 = pneg %p1780_p6 }
 0x6c5   : > { %2302 = dma.done.wait (%p1781_p7), %s1417_s18, 32  }
 0x6c6   : > { %2304 = vsyncadd (%p1781_p7), %s1417_s18, 4294967264  ;;  %s35_s22 = sadd.s32 1, %s3253_s19   ;;  %s3257_s30 = sld [smem:[#allocation26_spill]] }
 0x6c7   : > { %p3081_p9 = scmp.ge.s32.totalorder %s35_s22, 6   ;;  %s3258_s12 = sld [smem:[#allocation27_spill]] }
 0x6c8   : > { %s3259_s13 = sld [smem:[#allocation28_spill]]  ;;  %s3264_s10 = smov %s2315_s11 }
 0x6c9   : > { %s3260_s24 = sld [smem:[#allocation30_spill]]  ;;  %s3265_s11 = smov %s2724_s15 }
 0x6ca   : > { %s3261_s9 = sld [smem:[#allocation44_spill]]  ;;  %s3266_s14 = smov %s3279_s26 }
 0x6cb   : > { %s3262_s19 = sld [smem:[#allocation33_spill]]  ;;  %s3268_s16 = smov %s2339_s17 }
 0x6cc   : > { %s3263_s21 = sld [smem:[#allocation42_spill]]  ;;  %s3270_s18 = smov %s2351_s20 }
 0x6cd   : > { %s3271_s20 = smov %s3277_s1  ;;  %34 = sbr.rel (!%p3081_p9) target bundleno = 25 (0x19), region = 185 }
 0x6cf   : > { %s3267_s15 = smov %s3260_s24 }
 0x6d0   : > { %s3269_s17 = smov %s3261_s9 }
 0x6d2   :  { %1423 = vsyncpa [#allocation3], 1 }
 0x6d3   :  { %1425 = vsyncpa [#allocation3 + $0x1], 1 }
 0x6d4   :  { %1426 = vsyncpa [#allocation6], 1 }
 0x6d5   :  { %1428 = vsyncpa [#allocation6 + $0x1], 1 }
 0x6d6   :  { %1429 = vsyncpa [#allocation9], 1 }
 0x6d7   :  { %1430 = vsyncpa [#allocation12], 1 }
 0x6d8   :  { %1432 = vsyncpa [#allocation12 + $0x1], 1 }
 0x6d9   :  { %1433 = vsyncpa [#allocation15], 1 }
 0x6da   :  { %1435 = vsyncpa [#allocation15 + $0x1], 1 }
 0x6db   :  { %1436 = vsyncpa [#allocation4], 1 }
 0x6dc   :  { %1438 = vsyncpa [#allocation4 + $0x1], 1 }

</bundles_post_ra>
